<compile_context>
chip_gen: v7x
topology: tpu7x:2x2x1
jax: 0.10.0
libtpu: 0.0.40
codegen_flags: <defaults>
</compile_context>

<pallas_src>
import math
import functools

import jax
import jax.numpy as jnp
from jax.experimental import pallas as pl
from jax.experimental.pallas import tpu as pltpu


# ----------------------------------------------------------------------------
# Fused ISAB kernel: one batch element per grid step, both MABs + residual.
# ----------------------------------------------------------------------------
def _isab_kernel(H, D, matmul_dtype, emit_attn,
                 q0_ref, x_ref, wx_ref, bx_ref, wo0_ref, bo0_ref,
                 wkv1_ref, bkv1_ref, wo1_ref, bo1_ref, *out_refs):
    if emit_attn:
        o_ref, ha_ref, oa_ref = out_refs
    else:
        (o_ref,) = out_refs

    f32 = jnp.float32
    mdt = matmul_dtype
    ds = D // H

    x = x_ref[...].astype(f32)       # (N, dim_in) -- this batch element of X
    q0 = q0_ref[...].astype(f32)     # (M, D)      -- I @ Wq0 + bq0 (hoisted)

    def heads(t):
        # (rows, D) -> (H, rows, ds): one reshape + leading-dim transpose
        # (replaces the per-head lane-slice + concat loop).
        r = t.shape[0]
        return jnp.transpose(t.reshape(r, H, ds), (1, 0, 2))

    def mh_attention(q, k, v):
        # q: (Rq, D) f32; k, v: (Rk, D) f32; k is pre-scaled by 1/sqrt(D).
        qh, kh, vh = heads(q), heads(k), heads(v)               # (H, R, ds) f32
        s = jnp.einsum('hqd,hkd->hqk', qh.astype(mdt), kh.astype(mdt),
                       preferred_element_type=f32)              # (H, Rq, Rk)
        s = s - jnp.max(s, axis=-1, keepdims=True)
        e = jnp.exp(s)                                          # f32 elementwise
        a = e / jnp.sum(e, axis=-1, keepdims=True)              # exact softmax (A is returned)
        av = jnp.einsum('hqk,hkd->hqd', a.astype(mdt), vh.astype(mdt),
                        preferred_element_type=f32)             # (H, Rq, ds)
        o = jnp.transpose(qh + av, (1, 0, 2)).reshape(q.shape[0], D)  # head merge
        return o, a

    def ff_residual(o2, wo_ref, bo_ref):
        # O = O + relu(fc_o(O))
        ff = jnp.dot(o2.astype(mdt), wo_ref[...],
                     preferred_element_type=f32) + bo_ref[...]
        return o2 + jnp.maximum(ff, 0.0)

    # One fused MXU pass over X yields mab0's K, V and mab1's Q.
    xz = (jnp.dot(x.astype(mdt), wx_ref[...], preferred_element_type=f32)
          + bx_ref[...])                                        # (N, 3*D)
    k0, v0, q1 = xz[:, :D], xz[:, D:2 * D], xz[:, 2 * D:]

    # ---- mab0(I_b, X_b): H stays VMEM-resident, never touches HBM ----
    h0, a0 = mh_attention(q0, k0, v0)                           # (M, D), (H, M, N)
    h0 = ff_residual(h0, wo0_ref, bo0_ref)
    # TODO(synk): ln=True LayerNorm branch of MAB not implemented (ISAB default ln=False).

    # ---- mab1(X_b, H_b) ----
    kv1 = (jnp.dot(h0.astype(mdt), wkv1_ref[...], preferred_element_type=f32)
           + bkv1_ref[...])                                     # (M, 2*D)
    k1, v1 = kv1[:, :D], kv1[:, D:]
    o1, a1 = mh_attention(q1, k1, v1)                           # (N, D), (H, N, M)
    o1 = ff_residual(o1, wo1_ref, bo1_ref)

    # ISAB outer residual: o + X
    o_ref[...] = (o1 + x).astype(o_ref.dtype)

    if emit_attn:
        # Head-major (H, 1, q, k): torch's (H*B, q, k) layout (z = h*B + b) is
        # then a free, contiguous reshape in the wrapper.
        ha_ref[...] = jnp.expand_dims(a0, 1).astype(ha_ref.dtype)
        oa_ref[...] = jnp.expand_dims(a1, 1).astype(oa_ref.dtype)


# ----------------------------------------------------------------------------
# Wrapper
# ----------------------------------------------------------------------------
def _vmem_limit_bytes(N, M, H, D, dim_in, emit_attn):
    f32 = 4
    blocks = N * dim_in + N * D
    if emit_attn:
        blocks += H * M * N + H * N * M
    weights = (M * D + dim_in * 3 * D + 3 * D + D * 2 * D + 2 * D
               + 2 * (D * D + D))
    est = f32 * (2 * blocks + weights) * 4 + (1 << 20)   # dbl-buffer + temporaries
    # Floor at the v6e/v7x default scoped limit, stay under v7x's 64 MiB physical.
    return int(min(max(est, 32 << 20), 48 << 20))


def isab_forward(X, params, num_heads, *, return_attn=True,
                 matmul_dtype=jnp.bfloat16):
    B, N, dim_in = X.shape
    I = params["I"]                                   # (1, num_inds, dim_out)
    M, D = I.shape[1], I.shape[2]
    H = num_heads
    assert dim_in == D, "ISAB residual `o + X` requires dim_in == dim_out"
    assert D % H == 0

    m0, m1 = params["mab0"], params["mab1"]
    scale = 1.0 / math.sqrt(D)

    # Hoisted, parameter-only: query projection of the inducing points.
    q0 = (I[0] @ m0["wq"] + m0["bq"]).astype(jnp.float32)          # (M, D)

    # Fused X-fed projection: [ K0*scale | V0 | Q1 ]  (one (dim_in, 3*D) matmul).
    # The 1/sqrt(dim_V) score scale is folded into the K half only.
    wx = jnp.concatenate([m0["wk"] * scale, m0["wv"], m1["wq"]], axis=1)
    bx = jnp.concatenate([m0["bk"] * scale, m0["bv"], m1["bq"]]).reshape(1, 3 * D)

    # mab1's fused K|V projection of H, scale folded into the K half.
    wkv1 = jnp.concatenate([m1["wk"] * scale, m1["wv"]], axis=1)
    bkv1 = jnp.concatenate([m1["bk"] * scale, m1["bv"]]).reshape(1, 2 * D)

    wo0, bo0 = m0["wo"], m0["bo"].reshape(1, D)
    wo1, bo1 = m1["wo"], m1["bo"].reshape(1, D)

    # MXU operands in bf16 (f32 accumulation); biases / softmax math stay f32.
    wx, wkv1, wo0, wo1 = (w.astype(matmul_dtype) for w in (wx, wkv1, wo0, wo1))

    kernel = functools.partial(_isab_kernel, H, D, matmul_dtype, return_attn)

    def fixed(shape):  # whole (small) operand, same block every grid step
        return pl.BlockSpec(shape, lambda b, _n=len(shape): (0,) * _n)

    in_specs = [
        fixed((M, D)),                                          # q0 (I projected)
        pl.BlockSpec((None, N, dim_in), lambda b: (b, 0, 0)),   # X[b]
        fixed((dim_in, 3 * D)), fixed((1, 3 * D)),              # wx, bx
        fixed((D, D)), fixed((1, D)),                           # wo0, bo0
        fixed((D, 2 * D)), fixed((1, 2 * D)),                   # wkv1, bkv1
        fixed((D, D)), fixed((1, D)),                           # wo1, bo1
    ]
    out_shape = [jax.ShapeDtypeStruct((B, N, D), jnp.float32)]
    out_specs = [pl.BlockSpec((None, N, D), lambda b: (b, 0, 0))]
    if return_attn:
        out_shape += [jax.ShapeDtypeStruct((H, B, M, N), jnp.float32),
                      jax.ShapeDtypeStruct((H, B, N, M), jnp.float32)]
        out_specs += [pl.BlockSpec((H, 1, M, N), lambda b: (0, b, 0, 0)),
                      pl.BlockSpec((H, 1, N, M), lambda b: (0, b, 0, 0))]

    outs = pl.pallas_call(
        kernel,
        grid=(B,),
        in_specs=in_specs,
        out_specs=out_specs,
        out_shape=out_shape,
        compiler_params=pltpu.CompilerParams(
            dimension_semantics=("parallel",),
            vmem_limit_bytes=_vmem_limit_bytes(N, M, H, D, dim_in, return_attn)),
    )(q0, X, wx, bx, wo0, bo0, wkv1, bkv1, wo1, bo1)

    if return_attn:
        o, ha, oa = outs
        # (H, B, q, k) -> (H*B, q, k): contiguous, no transpose.
        return o, ha.reshape(H * B, M, N), oa.reshape(H * B, N, M)
    (o,) = outs
    return o


# ----------------------------------------------------------------------------
# Deterministic parameter init (matches nn.Linear / xavier_uniform shapes)
# ----------------------------------------------------------------------------
def init_linear(key, d_in, d_out):
    kw, kb = jax.random.split(key)
    bound = 1.0 / math.sqrt(d_in)
    w = jax.random.uniform(kw, (d_in, d_out), jnp.float32, -bound, bound)
    b = jax.random.uniform(kb, (d_out,), jnp.float32, -bound, bound)
    return w, b


def init_mab(key, dim_Q, dim_K, dim_V):
    ks = jax.random.split(key, 4)
    wq, bq = init_linear(ks[0], dim_Q, dim_V)
    wk, bk = init_linear(ks[1], dim_K, dim_V)
    wv, bv = init_linear(ks[2], dim_K, dim_V)
    wo, bo = init_linear(ks[3], dim_V, dim_V)
    return dict(wq=wq, bq=bq, wk=wk, bk=bk, wv=wv, bv=bv, wo=wo, bo=bo)


def init_isab(key, dim_in, dim_out, num_inds):
    k_i, k0, k1 = jax.random.split(key, 3)
    xavier_bound = math.sqrt(6.0 / (num_inds + dim_out))
    I = jax.random.uniform(k_i, (1, num_inds, dim_out), jnp.float32,
                           -xavier_bound, xavier_bound)
    return dict(
        I=I,
        mab0=init_mab(k0, dim_out, dim_in, dim_out),
        mab1=init_mab(k1, dim_in, dim_out, dim_out),
    )


if __name__ == "__main__":
    key = jax.random.PRNGKey(0)
    k_param, k_x = jax.random.split(key)

    B = 2          # batch (set count)
    N = 8          # set size
    dim_in = 32    # must equal dim_out for the `o + X` residual in ISAB
    dim_out = 32
    num_heads = 4
    num_inds = 8

    params = init_isab(k_param, dim_in, dim_out, num_inds)
    X = jax.random.normal(k_x, (B, N, dim_in), jnp.float32)

    fwd = jax.jit(functools.partial(isab_forward, num_heads=num_heads))
    o, h_A, o_a = fwd(X, params)
    jax.block_until_ready((o, h_A, o_a))

    assert o.shape == (B, N, dim_out)
    assert h_A.shape == (num_heads * B, num_inds, N)
    assert o_a.shape == (num_heads * B, N, num_inds)
    print("KERNEL_OK")
</pallas_src>

<mosaic_0001>
module attributes {stable_mosaic.version = 11 : i64} {
  func.func @_isab_kernel(%arg0: i32, %arg1: memref<8x32xf32, #tpu.memory_space<vmem>>, %arg2: memref<1x8x32xf32, #tpu.memory_space<vmem>>, %arg3: memref<32x96xbf16, #tpu.memory_space<vmem>>, %arg4: memref<1x96xf32, #tpu.memory_space<vmem>>, %arg5: memref<32x32xbf16, #tpu.memory_space<vmem>>, %arg6: memref<1x32xf32, #tpu.memory_space<vmem>>, %arg7: memref<32x64xbf16, #tpu.memory_space<vmem>>, %arg8: memref<1x64xf32, #tpu.memory_space<vmem>>, %arg9: memref<32x32xbf16, #tpu.memory_space<vmem>>, %arg10: memref<1x32xf32, #tpu.memory_space<vmem>>, %arg11: memref<1x8x32xf32, #tpu.memory_space<vmem>>, %arg12: memref<4x1x8x8xf32, #tpu.memory_space<vmem>>, %arg13: memref<4x1x8x8xf32, #tpu.memory_space<vmem>>) attributes {dimension_semantics = [#tpu.dimension_semantics<parallel>], iteration_bounds = array<i64: 2>, scalar_prefetch = 0 : i64, scratch_operands = 0 : i64, tpu.core_type = #tpu.core_type<tc>, window_params = [{pipeline_mode = #tpu.pipeline_mode<synchronous>, transform_indices = @transform_0, window_bounds = array<i64: 8, 32>}, {transform_indices = @transform_1, window_bounds = array<i64: 1, 8, 32>}, {pipeline_mode = #tpu.pipeline_mode<synchronous>, transform_indices = @transform_2, window_bounds = array<i64: 32, 96>}, {pipeline_mode = #tpu.pipeline_mode<synchronous>, transform_indices = @transform_3, window_bounds = array<i64: 1, 96>}, {pipeline_mode = #tpu.pipeline_mode<synchronous>, transform_indices = @transform_4, window_bounds = array<i64: 32, 32>}, {pipeline_mode = #tpu.pipeline_mode<synchronous>, transform_indices = @transform_5, window_bounds = array<i64: 1, 32>}, {pipeline_mode = #tpu.pipeline_mode<synchronous>, transform_indices = @transform_6, window_bounds = array<i64: 32, 64>}, {pipeline_mode = #tpu.pipeline_mode<synchronous>, transform_indices = @transform_7, window_bounds = array<i64: 1, 64>}, {pipeline_mode = #tpu.pipeline_mode<synchronous>, transform_indices = @transform_8, window_bounds = array<i64: 32, 32>}, {pipeline_mode = #tpu.pipeline_mode<synchronous>, transform_indices = @transform_9, window_bounds = array<i64: 1, 32>}, {transform_indices = @transform_10, window_bounds = array<i64: 1, 8, 32>}, {transform_indices = @transform_11, window_bounds = array<i64: 4, 1, 8, 8>}, {transform_indices = @transform_12, window_bounds = array<i64: 4, 1, 8, 8>}]} {
    %c0 = arith.constant 0 : index
    %c0_0 = arith.constant 0 : index
    %c0_1 = arith.constant 0 : index
    %0 = vector.load %arg2[%c0, %c0_0, %c0_1] : memref<1x8x32xf32, #tpu.memory_space<vmem>>, vector<1x8x32xf32>
    %1 = vector.shape_cast %0 : vector<1x8x32xf32> to vector<8x32xf32>
    %c0_2 = arith.constant 0 : index
    %c0_3 = arith.constant 0 : index
    %2 = vector.load %arg1[%c0_2, %c0_3] : memref<8x32xf32, #tpu.memory_space<vmem>>, vector<8x32xf32>
    %3 = arith.truncf %1 : vector<8x32xf32> to vector<8x32xbf16>
    %c0_4 = arith.constant 0 : index
    %c0_5 = arith.constant 0 : index
    %4 = vector.load %arg3[%c0_4, %c0_5] : memref<32x96xbf16, #tpu.memory_space<vmem>>, vector<32x96xbf16>
    %cst = arith.constant dense<0.000000e+00> : vector<8x96xf32>
    %5 = tpu.matmul %3, %4, %cst {dimension_numbers = #tpu.dot_dimension_numbers<[1], [0], [0], [1], [0, 0, 1, 1], [], []>} : vector<8x32xbf16>, vector<32x96xbf16>, vector<8x96xf32> -> vector<8x96xf32>
    %c0_6 = arith.constant 0 : index
    %c0_7 = arith.constant 0 : index
    %6 = vector.load %arg4[%c0_6, %c0_7] : memref<1x96xf32, #tpu.memory_space<vmem>>, vector<1x96xf32>
    %7 = vector.broadcast %6 : vector<1x96xf32> to vector<8x96xf32>
    %8 = arith.addf %5, %7 : vector<8x96xf32>
    %9 = vector.extract_strided_slice %8 {offsets = [0, 0], sizes = [8, 32], strides = [1, 1]} : vector<8x96xf32> to vector<8x32xf32>
    %10 = vector.extract_strided_slice %8 {offsets = [0, 32], sizes = [8, 32], strides = [1, 1]} : vector<8x96xf32> to vector<8x32xf32>
    %11 = vector.extract_strided_slice %8 {offsets = [0, 64], sizes = [8, 32], strides = [1, 1]} : vector<8x96xf32> to vector<8x32xf32>
    %12 = vector.shape_cast %2 : vector<8x32xf32> to vector<8x4x8xf32>
    %13 = tpu.transpose %12, [1, 0, 2] : vector<8x4x8xf32> -> vector<4x8x8xf32>
    %14 = vector.shape_cast %9 : vector<8x32xf32> to vector<8x4x8xf32>
    %15 = tpu.transpose %14, [1, 0, 2] : vector<8x4x8xf32> -> vector<4x8x8xf32>
    %16 = vector.shape_cast %10 : vector<8x32xf32> to vector<8x4x8xf32>
    %17 = tpu.transpose %16, [1, 0, 2] : vector<8x4x8xf32> -> vector<4x8x8xf32>
    %18 = arith.truncf %13 : vector<4x8x8xf32> to vector<4x8x8xbf16>
    %19 = arith.truncf %15 : vector<4x8x8xf32> to vector<4x8x8xbf16>
    "tpu.trace_start"() <{level = 10 : i32, message = "hqd,hkd->hqk"}> : () -> ()
    %cst_8 = arith.constant dense<0.000000e+00> : vector<4x8x8xf32>
    %20 = tpu.matmul %18, %19, %cst_8 {dimension_numbers = #tpu.dot_dimension_numbers<[2], [2], [1], [1], [0, 0, 0, 1, 1, 1], [0], [0]>} : vector<4x8x8xbf16>, vector<4x8x8xbf16>, vector<4x8x8xf32> -> vector<4x8x8xf32>
    "tpu.trace_stop"() : () -> ()
    %cst_9 = arith.constant dense<0xFF800000> : vector<4x8xf32>
    %21 = vector.multi_reduction <maximumf>, %20, %cst_9 [2] : vector<4x8x8xf32> to vector<4x8xf32>
    %22 = vector.shape_cast %21 : vector<4x8xf32> to vector<4x8x1xf32>
    %23 = vector.broadcast %22 : vector<4x8x1xf32> to vector<4x8x8xf32>
    %24 = arith.subf %20, %23 : vector<4x8x8xf32>
    %25 = math.exp %24 : vector<4x8x8xf32>
    %cst_10 = arith.constant dense<0.000000e+00> : vector<4x8xf32>
    %26 = vector.multi_reduction <add>, %25, %cst_10 [2] : vector<4x8x8xf32> to vector<4x8xf32>
    %27 = vector.shape_cast %26 : vector<4x8xf32> to vector<4x8x1xf32>
    %28 = vector.broadcast %27 : vector<4x8x1xf32> to vector<4x8x8xf32>
    %29 = arith.divf %25, %28 : vector<4x8x8xf32>
    %30 = arith.truncf %29 : vector<4x8x8xf32> to vector<4x8x8xbf16>
    %31 = arith.truncf %17 : vector<4x8x8xf32> to vector<4x8x8xbf16>
    "tpu.trace_start"() <{level = 10 : i32, message = "hqk,hkd->hqd"}> : () -> ()
    %cst_11 = arith.constant dense<0.000000e+00> : vector<4x8x8xf32>
    %32 = tpu.matmul %30, %31, %cst_11 {dimension_numbers = #tpu.dot_dimension_numbers<[2], [1], [1], [2], [0, 0, 0, 1, 1, 2], [0], [0]>} : vector<4x8x8xbf16>, vector<4x8x8xbf16>, vector<4x8x8xf32> -> vector<4x8x8xf32>
    "tpu.trace_stop"() : () -> ()
    %33 = arith.addf %13, %32 : vector<4x8x8xf32>
    %34 = tpu.transpose %33, [1, 0, 2] : vector<4x8x8xf32> -> vector<8x4x8xf32>
    %35 = vector.shape_cast %34 : vector<8x4x8xf32> to vector<8x32xf32>
    %36 = arith.truncf %35 : vector<8x32xf32> to vector<8x32xbf16>
    %c0_12 = arith.constant 0 : index
    %c0_13 = arith.constant 0 : index
    %37 = vector.load %arg5[%c0_12, %c0_13] : memref<32x32xbf16, #tpu.memory_space<vmem>>, vector<32x32xbf16>
    %cst_14 = arith.constant dense<0.000000e+00> : vector<8x32xf32>
    %38 = tpu.matmul %36, %37, %cst_14 {dimension_numbers = #tpu.dot_dimension_numbers<[1], [0], [0], [1], [0, 0, 1, 1], [], []>} : vector<8x32xbf16>, vector<32x32xbf16>, vector<8x32xf32> -> vector<8x32xf32>
    %c0_15 = arith.constant 0 : index
    %c0_16 = arith.constant 0 : index
    %39 = vector.load %arg6[%c0_15, %c0_16] : memref<1x32xf32, #tpu.memory_space<vmem>>, vector<1x32xf32>
    %40 = vector.broadcast %39 : vector<1x32xf32> to vector<8x32xf32>
    %41 = arith.addf %38, %40 : vector<8x32xf32>
    %cst_17 = arith.constant 0.000000e+00 : f32
    %42 = vector.broadcast %cst_17 : f32 to vector<8x32xf32>
    %43 = arith.maximumf %41, %42 : vector<8x32xf32>
    %44 = arith.addf %35, %43 : vector<8x32xf32>
    %45 = arith.truncf %44 : vector<8x32xf32> to vector<8x32xbf16>
    %c0_18 = arith.constant 0 : index
    %c0_19 = arith.constant 0 : index
    %46 = vector.load %arg7[%c0_18, %c0_19] : memref<32x64xbf16, #tpu.memory_space<vmem>>, vector<32x64xbf16>
    %cst_20 = arith.constant dense<0.000000e+00> : vector<8x64xf32>
    %47 = tpu.matmul %45, %46, %cst_20 {dimension_numbers = #tpu.dot_dimension_numbers<[1], [0], [0], [1], [0, 0, 1, 1], [], []>} : vector<8x32xbf16>, vector<32x64xbf16>, vector<8x64xf32> -> vector<8x64xf32>
    %c0_21 = arith.constant 0 : index
    %c0_22 = arith.constant 0 : index
    %48 = vector.load %arg8[%c0_21, %c0_22] : memref<1x64xf32, #tpu.memory_space<vmem>>, vector<1x64xf32>
    %49 = vector.broadcast %48 : vector<1x64xf32> to vector<8x64xf32>
    %50 = arith.addf %47, %49 : vector<8x64xf32>
    %51 = vector.extract_strided_slice %50 {offsets = [0, 0], sizes = [8, 32], strides = [1, 1]} : vector<8x64xf32> to vector<8x32xf32>
    %52 = vector.extract_strided_slice %50 {offsets = [0, 32], sizes = [8, 32], strides = [1, 1]} : vector<8x64xf32> to vector<8x32xf32>
    %53 = vector.shape_cast %11 : vector<8x32xf32> to vector<8x4x8xf32>
    %54 = tpu.transpose %53, [1, 0, 2] : vector<8x4x8xf32> -> vector<4x8x8xf32>
    %55 = vector.shape_cast %51 : vector<8x32xf32> to vector<8x4x8xf32>
    %56 = tpu.transpose %55, [1, 0, 2] : vector<8x4x8xf32> -> vector<4x8x8xf32>
    %57 = vector.shape_cast %52 : vector<8x32xf32> to vector<8x4x8xf32>
    %58 = tpu.transpose %57, [1, 0, 2] : vector<8x4x8xf32> -> vector<4x8x8xf32>
    %59 = arith.truncf %54 : vector<4x8x8xf32> to vector<4x8x8xbf16>
    %60 = arith.truncf %56 : vector<4x8x8xf32> to vector<4x8x8xbf16>
    "tpu.trace_start"() <{level = 10 : i32, message = "hqd,hkd->hqk"}> : () -> ()
    %cst_23 = arith.constant dense<0.000000e+00> : vector<4x8x8xf32>
    %61 = tpu.matmul %59, %60, %cst_23 {dimension_numbers = #tpu.dot_dimension_numbers<[2], [2], [1], [1], [0, 0, 0, 1, 1, 1], [0], [0]>} : vector<4x8x8xbf16>, vector<4x8x8xbf16>, vector<4x8x8xf32> -> vector<4x8x8xf32>
    "tpu.trace_stop"() : () -> ()
    %cst_24 = arith.constant dense<0xFF800000> : vector<4x8xf32>
    %62 = vector.multi_reduction <maximumf>, %61, %cst_24 [2] : vector<4x8x8xf32> to vector<4x8xf32>
    %63 = vector.shape_cast %62 : vector<4x8xf32> to vector<4x8x1xf32>
    %64 = vector.broadcast %63 : vector<4x8x1xf32> to vector<4x8x8xf32>
    %65 = arith.subf %61, %64 : vector<4x8x8xf32>
    %66 = math.exp %65 : vector<4x8x8xf32>
    %cst_25 = arith.constant dense<0.000000e+00> : vector<4x8xf32>
    %67 = vector.multi_reduction <add>, %66, %cst_25 [2] : vector<4x8x8xf32> to vector<4x8xf32>
    %68 = vector.shape_cast %67 : vector<4x8xf32> to vector<4x8x1xf32>
    %69 = vector.broadcast %68 : vector<4x8x1xf32> to vector<4x8x8xf32>
    %70 = arith.divf %66, %69 : vector<4x8x8xf32>
    %71 = arith.truncf %70 : vector<4x8x8xf32> to vector<4x8x8xbf16>
    %72 = arith.truncf %58 : vector<4x8x8xf32> to vector<4x8x8xbf16>
    "tpu.trace_start"() <{level = 10 : i32, message = "hqk,hkd->hqd"}> : () -> ()
    %cst_26 = arith.constant dense<0.000000e+00> : vector<4x8x8xf32>
    %73 = tpu.matmul %71, %72, %cst_26 {dimension_numbers = #tpu.dot_dimension_numbers<[2], [1], [1], [2], [0, 0, 0, 1, 1, 2], [0], [0]>} : vector<4x8x8xbf16>, vector<4x8x8xbf16>, vector<4x8x8xf32> -> vector<4x8x8xf32>
    "tpu.trace_stop"() : () -> ()
    %74 = arith.addf %54, %73 : vector<4x8x8xf32>
    %75 = tpu.transpose %74, [1, 0, 2] : vector<4x8x8xf32> -> vector<8x4x8xf32>
    %76 = vector.shape_cast %75 : vector<8x4x8xf32> to vector<8x32xf32>
    %77 = arith.truncf %76 : vector<8x32xf32> to vector<8x32xbf16>
    %c0_27 = arith.constant 0 : index
    %c0_28 = arith.constant 0 : index
    %78 = vector.load %arg9[%c0_27, %c0_28] : memref<32x32xbf16, #tpu.memory_space<vmem>>, vector<32x32xbf16>
    %cst_29 = arith.constant dense<0.000000e+00> : vector<8x32xf32>
    %79 = tpu.matmul %77, %78, %cst_29 {dimension_numbers = #tpu.dot_dimension_numbers<[1], [0], [0], [1], [0, 0, 1, 1], [], []>} : vector<8x32xbf16>, vector<32x32xbf16>, vector<8x32xf32> -> vector<8x32xf32>
    %c0_30 = arith.constant 0 : index
    %c0_31 = arith.constant 0 : index
    %80 = vector.load %arg10[%c0_30, %c0_31] : memref<1x32xf32, #tpu.memory_space<vmem>>, vector<1x32xf32>
    %81 = vector.broadcast %80 : vector<1x32xf32> to vector<8x32xf32>
    %82 = arith.addf %79, %81 : vector<8x32xf32>
    %cst_32 = arith.constant 0.000000e+00 : f32
    %83 = vector.broadcast %cst_32 : f32 to vector<8x32xf32>
    %84 = arith.maximumf %82, %83 : vector<8x32xf32>
    %85 = arith.addf %76, %84 : vector<8x32xf32>
    %86 = arith.addf %85, %1 : vector<8x32xf32>
    %c0_33 = arith.constant 0 : index
    %c0_34 = arith.constant 0 : index
    %c0_35 = arith.constant 0 : index
    %87 = vector.load %arg11[%c0_33, %c0_34, %c0_35] : memref<1x8x32xf32, #tpu.memory_space<vmem>>, vector<1x8x32xf32>
    %88 = vector.shape_cast %87 : vector<1x8x32xf32> to vector<8x32xf32>
    %89 = vector.shape_cast %86 : vector<8x32xf32> to vector<1x8x32xf32>
    tpu.vector_store %arg11[%c0_33, %c0_34, %c0_35], %89 {strides = array<i32>} : memref<1x8x32xf32, #tpu.memory_space<vmem>>, vector<1x8x32xf32>,
    %90 = vector.shape_cast %29 : vector<4x8x8xf32> to vector<4x1x8x8xf32>
    %c0_36 = arith.constant 0 : index
    %c0_37 = arith.constant 0 : index
    %c0_38 = arith.constant 0 : index
    %c0_39 = arith.constant 0 : index
    %91 = vector.load %arg12[%c0_36, %c0_37, %c0_38, %c0_39] : memref<4x1x8x8xf32, #tpu.memory_space<vmem>>, vector<4x1x8x8xf32>
    tpu.vector_store %arg12[%c0_36, %c0_37, %c0_38, %c0_39], %90 {strides = array<i32>} : memref<4x1x8x8xf32, #tpu.memory_space<vmem>>, vector<4x1x8x8xf32>,
    %92 = vector.shape_cast %70 : vector<4x8x8xf32> to vector<4x1x8x8xf32>
    %c0_40 = arith.constant 0 : index
    %c0_41 = arith.constant 0 : index
    %c0_42 = arith.constant 0 : index
    %c0_43 = arith.constant 0 : index
    %93 = vector.load %arg13[%c0_40, %c0_41, %c0_42, %c0_43] : memref<4x1x8x8xf32, #tpu.memory_space<vmem>>, vector<4x1x8x8xf32>
    tpu.vector_store %arg13[%c0_40, %c0_41, %c0_42, %c0_43], %92 {strides = array<i32>} : memref<4x1x8x8xf32, #tpu.memory_space<vmem>>, vector<4x1x8x8xf32>,
    return
  }
  func.func @transform_0(%arg0: i32) -> (i32, i32) {
    %c0_i32 = arith.constant 0 : i32
    %c0_i32_0 = arith.constant 0 : i32
    %c0_i32_1 = arith.constant 0 : i32
    return %c0_i32, %c0_i32_0 : i32, i32
  }
  func.func @transform_1(%arg0: i32) -> (i32, i32, i32) {
    %c0_i32 = arith.constant 0 : i32
    %c0_i32_0 = arith.constant 0 : i32
    %c0_i32_1 = arith.constant 0 : i32
    return %arg0, %c0_i32, %c0_i32_0 : i32, i32, i32
  }
  func.func @transform_2(%arg0: i32) -> (i32, i32) {
    %c0_i32 = arith.constant 0 : i32
    %c0_i32_0 = arith.constant 0 : i32
    %c0_i32_1 = arith.constant 0 : i32
    return %c0_i32, %c0_i32_0 : i32, i32
  }
  func.func @transform_3(%arg0: i32) -> (i32, i32) {
    %c0_i32 = arith.constant 0 : i32
    %c0_i32_0 = arith.constant 0 : i32
    %c0_i32_1 = arith.constant 0 : i32
    return %c0_i32, %c0_i32_0 : i32, i32
  }
  func.func @transform_4(%arg0: i32) -> (i32, i32) {
    %c0_i32 = arith.constant 0 : i32
    %c0_i32_0 = arith.constant 0 : i32
    %c0_i32_1 = arith.constant 0 : i32
    return %c0_i32, %c0_i32_0 : i32, i32
  }
  func.func @transform_5(%arg0: i32) -> (i32, i32) {
    %c0_i32 = arith.constant 0 : i32
    %c0_i32_0 = arith.constant 0 : i32
    %c0_i32_1 = arith.constant 0 : i32
    return %c0_i32, %c0_i32_0 : i32, i32
  }
  func.func @transform_6(%arg0: i32) -> (i32, i32) {
    %c0_i32 = arith.constant 0 : i32
    %c0_i32_0 = arith.constant 0 : i32
    %c0_i32_1 = arith.constant 0 : i32
    return %c0_i32, %c0_i32_0 : i32, i32
  }
  func.func @transform_7(%arg0: i32) -> (i32, i32) {
    %c0_i32 = arith.constant 0 : i32
    %c0_i32_0 = arith.constant 0 : i32
    %c0_i32_1 = arith.constant 0 : i32
    return %c0_i32, %c0_i32_0 : i32, i32
  }
  func.func @transform_8(%arg0: i32) -> (i32, i32) {
    %c0_i32 = arith.constant 0 : i32
    %c0_i32_0 = arith.constant 0 : i32
    %c0_i32_1 = arith.constant 0 : i32
    return %c0_i32, %c0_i32_0 : i32, i32
  }
  func.func @transform_9(%arg0: i32) -> (i32, i32) {
    %c0_i32 = arith.constant 0 : i32
    %c0_i32_0 = arith.constant 0 : i32
    %c0_i32_1 = arith.constant 0 : i32
    return %c0_i32, %c0_i32_0 : i32, i32
  }
  func.func @transform_10(%arg0: i32) -> (i32, i32, i32) {
    %c0_i32 = arith.constant 0 : i32
    %c0_i32_0 = arith.constant 0 : i32
    %c0_i32_1 = arith.constant 0 : i32
    return %arg0, %c0_i32, %c0_i32_0 : i32, i32, i32
  }
  func.func @transform_11(%arg0: i32) -> (i32, i32, i32, i32) {
    %c0_i32 = arith.constant 0 : i32
    %c0_i32_0 = arith.constant 0 : i32
    %c0_i32_1 = arith.constant 0 : i32
    %c0_i32_2 = arith.constant 0 : i32
    return %c0_i32, %arg0, %c0_i32_0, %c0_i32_1 : i32, i32, i32, i32
  }
  func.func @transform_12(%arg0: i32) -> (i32, i32, i32, i32) {
    %c0_i32 = arith.constant 0 : i32
    %c0_i32_0 = arith.constant 0 : i32
    %c0_i32_1 = arith.constant 0 : i32
    %c0_i32_2 = arith.constant 0 : i32
    return %c0_i32, %arg0, %c0_i32_0, %c0_i32_1 : i32, i32, i32, i32
  }
}

</mosaic_0001>

<bundles_post_ra>
// kernel: isab_forward.1
= control target key start
LH: loop header
LB: loop body
LE: loop exit
PB: predicated region body
PF: predicated region fallthrough
CT: control target
= control target key end

     0   :  { %s4126_s0 = inlined_call_operand.vmem [shape: f32[8,32], index: 0, kind: input, shape index: {}]   ;;  %s4127_s1 = inlined_call_operand.vmem [shape: f32[2,8,32], index: 1, kind: input, shape index: {}]   ;;  %s4128_s2 = inlined_call_operand.vmem [shape: bf16[32,96], index: 2, kind: input, shape index: {}]   ;;  %s4129_s3 = inlined_call_operand.vmem [shape: f32[1,96], index: 3, kind: input, shape index: {}]   ;;  %s4130_s4 = inlined_call_operand.vmem [shape: bf16[32,32], index: 4, kind: input, shape index: {}]   ;;  %s4131_s5 = inlined_call_operand.vmem [shape: f32[1,32], index: 5, kind: input, shape index: {}]   ;;  %s4132_s6 = inlined_call_operand.vmem [shape: bf16[32,64], index: 6, kind: input, shape index: {}]   ;;  %s4133_s7 = inlined_call_operand.vmem [shape: f32[1,64], index: 7, kind: input, shape index: {}]   ;;  %s4134_s8 = inlined_call_operand.vmem [shape: bf16[32,32], index: 8, kind: input, shape index: {}]   ;;  %s4135_s9 = inlined_call_operand.vmem [shape: f32[1,32], index: 9, kind: input, shape index: {}]   ;;  %s4136_s10 = inlined_call_operand.hbm [shape: f32[2,8,32], index: 10, kind: output, shape index: {0}]   ;;  %s4137_s11 = inlined_call_operand.hbm [shape: f32[4,2,8,8], index: 11, kind: output, shape index: {1}]   ;;  %s4138_s12 = inlined_call_operand.hbm [shape: f32[4,2,8,8], index: 12, kind: output, shape index: {2}]  }
   0x1   :  { %4150 = sst [smem:[#allocation9_spill]] %s4126_s0 }
   0x2   :  { %4151 = sst [smem:[#allocation10_spill]] %s4127_s1 }
   0x3   :  { %4152 = sst [smem:[#allocation11_spill]] %s4128_s2 }
   0x4   :  { %4153 = sst [smem:[#allocation12_spill]] %s4129_s3 }
   0x5   :  { %4154 = sst [smem:[#allocation13_spill]] %s4130_s4 }
   0x6   :  { %4155 = sst [smem:[#allocation14_spill]] %s4131_s5 }
   0x7   :  { %4156 = sst [smem:[#allocation15_spill]] %s4132_s6 }
   0x8   :  { %18 = vsyncpa [#allocation3], 0 }
   0x9   :  { %20 = vsyncpa [#allocation3 + $0x1], 0 }
   0xa   :  { %21 = vsyncpa [#allocation5], 0 }
   0xb   :  { %23 = vsyncpa [#allocation5 + $0x1], 0  ;;  %s3485_s21 = smov 0   ;;  %s3487_s22 = smov 0  }
   0xc   :  { %s3489_s23 = smov 0   ;;  %s3491_s24 = smov 0  }
   0xd LB: > { %s3506_s25 = sadd.s32 4294967295, %s3401_s24   ;;  %s4139_s26 = sadd.s32 4294967294, %s3401_s24   ;;  %s3401_s24 = sphi %s3491_s24, %s4179_s24   ;;  %s3397_s23 = sphi %s3489_s23, %s4178_s23   ;;  %s3393_s22 = sphi %s3487_s22, %s4177_s22   ;;  %s3389_s21 = sphi %s3485_s21, %s4176_s21  }
   0xe   : > { %s3510_s27 = sadd.s32 1, %s3401_s24   ;;  %s251_s28 = sadd.s32 1, %s3397_s23 }
   0xf   : > { %s248_s29 = ssub.s32 %s3401_s24, %s3510_s27  ;;  %p261_p0 = scmp.ne.s32.totalorder %s3397_s23, %s3393_s22 }
  0x10   : > { %p249_p1 = scmp.eq.s32.totalorder %s248_s29, 0  ;;  %p262_p2 = scmp.eq.s32.totalorder %s3506_s25, 1 }
  0x11   : > { %p267_p3 = scmp.ne.s32.totalorder %s3393_s22, %s3389_s21  ;;  %p268_p4 = scmp.eq.s32.totalorder %s4139_s26, 1 }
  0x12   : > { %s3523_s30 = scalar_select %p249_p1, %s3397_s23, %s251_s28  }
  0x13   : > { %p3525_p5 = por %p262_p2, %p261_p0  ;;  %p3529_p6 = por %p268_p4, %p267_p3 }
  0x14   : > { %p2942_p7 = scmp.ge.s32.totalorder %s3401_s24, 1  ;;  %p372_p8 = scmp.lt.s32.totalorder %s3401_s24, 3 }
  0x16   : > { %p373_p9 = pnand %p2942_p7, %p372_p8 }
  0x17   : > { %s4159_s2 = sld [smem:[#allocation11_spill]] (!%p373_p9)  ;;  %v3403_v1 = vmov (!%p373_p9), 0.0   ;;  %vm3404_vm0 = vmmov (!%p373_p9), 0   ;;  %p423_p10 = scmp.lt.s32.totalorder (!%p373_p9), %s3506_s25, 1  ;;  %vm454_vm1 = vcmask (!%p373_p9), 261120   ;;  %v513_v14 = vlaneseq (!%p373_p9) }
  0x18   : > { %376 = sbr.rel (%p373_p9) target bundleno = 3093 (0xc15), region = 60  ;;  %3047 = vmatprep.subr.bf16.mxu0 (!%p373_p9), %v3403_v1  ;;  %3055 = vmatprep.subr.bf16.mxu1 (!%p373_p9), %v3403_v1  ;;  %s4160_s1 = sld [smem:[#allocation10_spill]] (!%p373_p9)  ;;  %v3408_v12 = vmov (!%p373_p9), 1983009808   ;;  %v3409_v15 = vmov (!%p373_p9), 1934713408  }
  0x19   : > { %3051 = vmatprep.mubr.msk.bf16.mxu0 (!%p373_p9), %vm3404_vm0, %v3403_v1  ;;  %3057 = vmatprep.mubr.msk.bf16.mxu1 (!%p373_p9), %vm3404_vm0, %v3403_v1  ;;  %s4161_s3 = sld [smem:[#allocation12_spill]] (!%p373_p9)  ;;  %s4143_s18 = smov (!%p373_p9), 104   ;;  %v511_v13 = vunpack.c.l.s4 (!%p373_p9), %v3408_v12  ;;  %v543_v16 = vunpack.c.l.s4 (!%p373_p9), %v3409_v15  ;;  %v514_v18 = vshrl.u32 (!%p373_p9), %v513_v14, 7  ;;  %vm946_vm2 = vcmask (!%p373_p9), 64512  }
  0x1a   : > { %s4162_s0 = sld [smem:[#allocation9_spill]] (!%p373_p9)  ;;  %s4149_s29 = smov (!%p373_p9), 112   ;;  %vm1186_vm3 = vcmask (!%p373_p9), 1043456   ;;  %vm1521_vm4 = vcmask (!%p373_p9), 130048   ;;  %vm1523_vm5 = vcmask (!%p373_p9), 195584  }
  0x1b   : > { %v512_v17 = vunpack.c.0.s8 (!%p373_p9), %v511_v13  ;;  %v544_v21 = vunpack.c.0.s8 (!%p373_p9), %v543_v16  ;;  %s4141_s16 = smov (!%p373_p9), 96   ;;  %s3686_s17 = sand.u32 (!%p373_p9), 1, %s3393_s22  }
  0x1c   : > { %s4163_s4 = sld [smem:[#allocation13_spill]] (!%p373_p9)  ;;  %s4147_s26 = smov (!%p373_p9), 16  }
  0x1d   : > { %v3238_v0 = vld [vmem:[%s4159_s2] sm:$0xff] (!%p373_p9)   ;;  %v3239_v2 = vld [vmem:[%s4159_s2 + $0x8] sm:$0xff] (!%p373_p9)   ;;  %v3581_v22 = vsub.s32 (!%p373_p9), %v512_v17, %v514_v18  ;;  %v3593_v29 = vsub.s32 (!%p373_p9), %v544_v21, %v514_v18  ;;  %s4164_s6 = sld [smem:[#allocation15_spill]] (!%p373_p9)  ;;  %s4165_s5 = sld [smem:[#allocation14_spill]] (!%p373_p9) }
  0x1e   : > { %3048 = vmatpush3.bf16.msra.mxu0 (!%p373_p9), %v3238_v0 }
  0x1f   : > { %3049 = vmatprep.subr.bf16.mxu0 %v3403_v1  ;;  %s424_s19 = scalar_select %p423_p10, %s3506_s25, 1  ;;  %v2947_v5 = vld [vmem:[%s4161_s3] ss:$0 sm:$0xff] }
  0x20   : > { %v429_v11 = vld [vmem:[%s4162_s0] sm:$0xff] }
  0x21   : > { %s2946_s20 = sshll.u32 %s424_s19, 3  ;;  %s4148_s19 = smov 120  }
  0x22   : > { %3050 = vmatpush3.bf16.msra.mxu0 %v3239_v2  ;;  %s3553_s15 = scalar_lea.vmem %s4160_s1, %s2946_s20  ;;  %s4140_s20 = sshll.u32 %s3686_s17, 5 }
  0x23   : > { %3061 = vmatprep.subr.bf16.mxu0 %v3403_v1  ;;  %v428_v3 = vld [vmem:[%s3553_s15] sm:$0xff]  ;;  %s3695_s28 = scalar_lea.vmem [#allocation4], %s4140_s20  ;;  %s4168_s20 = smov 104  }
  0x24   : > { %v430_v4 = vpack.c.bf16 %v428_v3, %v428_v3  ;;  %s2801_s2 = sshll.u32 %s3695_s28, 4  ;;  %s4006_s2 = int_to_ptr.vmem [resolvable:$true] %s2801_s2 }
  0x26   : > { %3052 = vmatmul.mubr.msk.bf16.vlgmr.msra.gmra.mrb[0].mxu0 %vm454_vm1, %v430_v4 }
  0x27   : > { %3063 = vmatprep.mubr.msk.bf16.mxu0 %vm3404_vm0, %v3403_v1 }
  0xf9   : > { %v492_v6 = vpop.f32.mrb[0].mxu0 }
  0xfa   : > { %v3563_v7 = vadd.f32 %v2947_v5, %v492_v6  ;;  %v3053_v8 = vpop.f32.mrb[1].mxu0 }
  0xfb   : > { %v495_v9 = vpop.f32.mrb[2].mxu0 }
  0xfc   : > { %651 = vrot.lane.b32.xlu1 %v3563_v7, %s4143_s18  ;;  %645 = vrot.lane.b32.xlu0 %v3563_v7, %s4148_s19  ;;  %v3054_v10 = vpop.f32.mrb[3].mxu0 }
 0x100   : > { %499 = vrot.lane.b32.xlu1 %v429_v11, %s4148_s19  ;;  %648 = vrot.lane.b32.xlu0 %v3563_v7, %s4149_s29  ;;  %s4166_s19 = smov 112  }
 0x104   : > { %505 = vrot.lane.b32.xlu1 %v429_v11, %s4143_s18  ;;  %502 = vrot.lane.b32.xlu0 %v429_v11, %s4149_s29  ;;  %s4144_s18 = smov 8   ;;  %s4167_s29 = smov 120  }
 0x16e   : > { %v3577_v19 = vpop.permute.xlu1 %651  ;;  %v3579_v20 = vpop.permute.xlu0 %645 }
 0x16f   : > { %v670_v23 = vcombine.low %v3579_v20, %v3577_v19  ;;  %v671_v24 = vcombine.high %v3579_v20, %v3577_v19 }
 0x171   : > { %v678_v30 = vrot.slane %v670_v23, %v3581_v22  ;;  %v685_v31 = vrot.slane %v671_v24, %v3581_v22 }
 0x172   : > { %v500_v25 = vpop.permute.xlu1 %499  ;;  %v3587_v26 = vpop.permute.xlu0 %648 }
 0x173   : > { %v654_v27 = vcombine.low %v3563_v7, %v3587_v26  ;;  %v655_v28 = vcombine.high %v3563_v7, %v3587_v26 }
 0x175   : > { %v662_v32 = vrot.slane %v654_v27, %v3581_v22  ;;  %v669_v33 = vrot.slane %v655_v28, %v3581_v22 }
 0x176   : > { %v506_v34 = vpop.permute.xlu1 %505  ;;  %v503_v35 = vpop.permute.xlu0 %502 }
 0x177   : > { %v686_v36 = vcombine.low %v662_v32, %v678_v30  ;;  %v687_v37 = vcombine.high %v662_v32, %v678_v30  ;;  %v702_v38 = vcombine.low %v669_v33, %v685_v31  ;;  %v703_v39 = vcombine.high %v669_v33, %v685_v31 }
 0x178   : > { %v524_v40 = vcombine.low %v500_v25, %v506_v34  ;;  %v525_v41 = vcombine.high %v500_v25, %v506_v34  ;;  %v508_v42 = vcombine.low %v429_v11, %v503_v35  ;;  %v509_v43 = vcombine.high %v429_v11, %v503_v35 }
 0x179   : > { %v694_v44 = vrot.slane %v686_v36, %v3593_v29  ;;  %v701_v45 = vrot.slane %v687_v37, %v3593_v29  ;;  %v710_v46 = vrot.slane %v702_v38, %v3593_v29  ;;  %v717_v47 = vrot.slane %v703_v39, %v3593_v29 }
 0x17a   : > { %v532_v48 = vrot.slane %v524_v40, %v3581_v22  ;;  %v539_v49 = vrot.slane %v525_v41, %v3581_v22  ;;  %v516_v50 = vrot.slane %v508_v42, %v3581_v22  ;;  %v523_v51 = vrot.slane %v509_v43, %v3581_v22 }
 0x17b   : > { %v722_v52 = vcombine.low %v694_v44, %v701_v45  ;;  %v2953_v53 = vcombine.high %v694_v44, %v701_v45  ;;  %v738_v54 = vcombine.low %v710_v46, %v717_v47  ;;  %v2954_v55 = vcombine.high %v710_v46, %v717_v47 }
 0x17c   : > { %v540_v56 = vcombine.low %v516_v50, %v532_v48  ;;  %v541_v57 = vcombine.high %v516_v50, %v532_v48  ;;  %v556_v58 = vcombine.low %v523_v51, %v539_v49  ;;  %v557_v59 = vcombine.high %v523_v51, %v539_v49 }
 0x17d   : > { %v729_v60 = vrot.slane %v722_v52, %v3581_v22  ;;  %v737_v61 = vrot.slane %v2953_v53, %v3581_v22  ;;  %v745_v62 = vrot.slane %v738_v54, %v3581_v22  ;;  %v753_v63 = vrot.slane %v2954_v55, %v3581_v22 }
 0x17e   : > { %v548_v0 = vrot.slane %v540_v56, %v3593_v29  ;;  %v555_v2 = vrot.slane %v541_v57, %v3593_v29  ;;  %v564_v3 = vrot.slane %v556_v58, %v3593_v29  ;;  %v571_v4 = vrot.slane %v557_v59, %v3593_v29 }
 0x17f   : > { %v754_v5 = vcombine.low %v729_v60, %v737_v61  ;;  %v770_v6 = vcombine.low %v745_v62, %v753_v63  ;;  %v755_v8 = vcombine.high %v729_v60, %v737_v61  ;;  %v771_v9 = vcombine.high %v745_v62, %v753_v63 }
 0x180   : > { %v576_v10 = vcombine.low %v548_v0, %v555_v2  ;;  %v2951_v11 = vcombine.high %v548_v0, %v555_v2  ;;  %v592_v12 = vcombine.low %v564_v3, %v571_v4  ;;  %v2952_v13 = vcombine.high %v564_v3, %v571_v4 }
 0x181   : > { %v762_v14 = vrot.slane %v754_v5, %v3593_v29  ;;  %v778_v15 = vrot.slane %v770_v6, %v3593_v29  ;;  %v769_v25 = vrot.slane %v755_v8, %v3593_v29  ;;  %v785_v27 = vrot.slane %v771_v9, %v3593_v29 }
 0x182   : > { %v583_v16 = vrot.slane %v576_v10, %v3581_v22  ;;  %v591_v17 = vrot.slane %v2951_v11, %v3581_v22  ;;  %v599_v18 = vrot.slane %v592_v12, %v3581_v22  ;;  %v607_v21 = vrot.slane %v2952_v13, %v3581_v22 }
 0x183   : > { %v786_v23 = vcombine.low %v762_v14, %v778_v15  ;;  %v787_v24 = vcombine.high %v762_v14, %v778_v15  ;;  %v788_v37 = vcombine.low %v769_v25, %v785_v27  ;;  %v789_v38 = vcombine.high %v769_v25, %v785_v27 }
 0x184   : > { %v608_v28 = vcombine.low %v583_v16, %v591_v17  ;;  %v624_v30 = vcombine.low %v599_v18, %v607_v21  ;;  %v609_v39 = vcombine.high %v583_v16, %v591_v17  ;;  %v625_v40 = vcombine.high %v599_v18, %v607_v21 }
 0x185   : > { %v942_v31 = vpack.c.bf16 %v786_v23, %v786_v23  ;;  %v943_v32 = vpack.c.bf16 %v787_v24, %v787_v24  ;;  %v944_v43 = vpack.c.bf16 %v788_v37, %v788_v37  ;;  %v945_v44 = vpack.c.bf16 %v789_v38, %v789_v38 }
 0x186   : > { %v616_v33 = vrot.slane %v608_v28, %v3593_v29  ;;  %v632_v34 = vrot.slane %v624_v30, %v3593_v29  ;;  %v623_v45 = vrot.slane %v609_v39, %v3593_v29  ;;  %v639_v46 = vrot.slane %v625_v40, %v3593_v29 }
 0x187   : > { %v951_v35 = vsel %vm946_vm2, %v942_v31, 0  ;;  %v997_v36 = vsel %vm946_vm2, %v943_v32, 0  ;;  %v1043_v49 = vsel %vm946_vm2, %v944_v43, 0  ;;  %v1089_v50 = vsel %vm946_vm2, %v945_v44, 0 }
 0x188   : > { %3056 = vmatpush3.bf16.xpose.msra.mxu1 %v951_v35  ;;  %3062 = vmatpush3.bf16.xpose.msra.mxu0 %v997_v36  ;;  %v3627_v41 = vcombine.low %v616_v33, %v632_v34  ;;  %v3629_v42 = vcombine.high %v616_v33, %v632_v34  ;;  %v3647_v51 = vcombine.low %v623_v45, %v639_v46 }
 0x189   : > { %3067 = vmatprep.subr.bf16.mxu1 %v3403_v1  ;;  %3073 = vmatprep.subr.bf16.mxu0 %v3403_v1  ;;  %v3649_v52 = vcombine.high %v623_v45, %v639_v46 }
 0x18a   : > { %v938_v47 = vpack.c.bf16 %v3627_v41, %v3627_v41  ;;  %v939_v48 = vpack.c.bf16 %v3629_v42, %v3629_v42  ;;  %v940_v53 = vpack.c.bf16 %v3647_v51, %v3647_v51 }
 0x18b   : > { %v941_v54 = vpack.c.bf16 %v3649_v52, %v3649_v52 }
 0x18f   : > { %3058 = vmatmul.mubr.msk.bf16.vlgmr.msra.gmra.mrb[0].mxu1 %vm946_vm2, %v938_v47  ;;  %3064 = vmatmul.mubr.msk.bf16.vlgmr.msra.gmra.mrb[4].mxu0 %vm946_vm2, %v939_v48 }
 0x190   : > { %3068 = vmatpush3.bf16.xpose.msra.mxu1 %v1043_v49  ;;  %3074 = vmatpush3.bf16.xpose.msra.mxu0 %v1089_v50 }
 0x191   : > { %3069 = vmatprep.mubr.msk.bf16.mxu1 %vm3404_vm0, %v3403_v1  ;;  %3075 = vmatprep.mubr.msk.bf16.mxu0 %vm3404_vm0, %v3403_v1 }
 0x192   : > { %3079 = vmatprep.subr.bf16.mxu1 %v3403_v1  ;;  %3085 = vmatprep.subr.bf16.mxu0 %v3403_v1 }
 0x197   : > { %3070 = vmatmul.mubr.msk.bf16.vlgmr.msra.gmra.mrb[4].mxu1 %vm946_vm2, %v940_v53  ;;  %3076 = vmatmul.mubr.msk.bf16.vlgmr.msra.gmra.mrb[8].mxu0 %vm946_vm2, %v941_v54 }
 0x198   : > { %3081 = vmatprep.mubr.msk.bf16.mxu1 %vm3404_vm0, %v3403_v1  ;;  %3087 = vmatprep.mubr.msk.bf16.mxu0 %vm3404_vm0, %v3403_v1 }
 0x262   : > { %v987_v55 = vpop.f32.mrb[0].mxu1  ;;  %v1033_v56 = vpop.f32.mrb[4].mxu0 }
 0x263   : > { %v3059_v57 = vpop.f32.mrb[1].mxu1  ;;  %v3065_v58 = vpop.f32.mrb[5].mxu0  ;;  %v1131_v59 = vsel %vm946_vm2, %v987_v55, -inf  ;;  %v1134_v60 = vsel %vm946_vm2, %v1033_v56, -inf }
 0x264   : > { %1132 = vmax.xlane.f32.xlu0 %v1131_v59  ;;  %v990_v61 = vpop.f32.mrb[2].mxu1  ;;  %1135 = vmax.xlane.f32.xlu1 %v1134_v60  ;;  %v1036_v62 = vpop.f32.mrb[6].mxu0 }
 0x265   : > { %v3060_v63 = vpop.f32.mrb[3].mxu1  ;;  %v3066_v0 = vpop.f32.mrb[7].mxu0 }
 0x26a   : > { %v1079_v2 = vpop.f32.mrb[4].mxu1  ;;  %v1125_v3 = vpop.f32.mrb[8].mxu0 }
 0x26b   : > { %v3071_v4 = vpop.f32.mrb[5].mxu1  ;;  %v3077_v5 = vpop.f32.mrb[9].mxu0  ;;  %v1137_v6 = vsel %vm946_vm2, %v1079_v2, -inf  ;;  %v1140_v12 = vsel %vm946_vm2, %v1125_v3, -inf }
 0x26c   : > { %1138 = vmax.xlane.f32.xlu0 %v1137_v6  ;;  %v1082_v8 = vpop.f32.mrb[6].mxu1  ;;  %v1128_v9 = vpop.f32.mrb[10].mxu0 }
 0x26d   : > { %v3072_v10 = vpop.f32.mrb[7].mxu1  ;;  %v3078_v11 = vpop.f32.mrb[11].mxu0 }
 0x270   : > { %1141 = vmax.xlane.f32.xlu0 %v1140_v12 }
 0x275   : > { %790 = vrot.lane.b32.xlu1 %v3563_v7, %s4141_s16 }
 0x2f1   : > { %v1133_v13 = vpop.xlane.xlu0 %1132  ;;  %v1136_v14 = vpop.xlane.xlu1 %1135 }
 0x2f2   : > { %v1143_v15 = vsub.f32 %v987_v55, %v1133_v13  ;;  %v1144_v16 = vsub.f32 %v1033_v56, %v1136_v14 }
 0x2f4   : > { %v1147_v17 = vmul.f32 1.442695, %v1143_v15  ;;  %v1149_v18 = vmul.f32 1.442695, %v1144_v16 }
 0x2f5   : > { %v791_v38 = vpop.permute.xlu1 %790 }
 0x2f6   : > { %3246 = vpow2.f32 %v1147_v17 }
 0x2f7   : > { %3248 = vpow2.f32 %v1149_v18 }
 0x2f9   : > { %v1139_v27 = vpop.xlane.xlu0 %1138 }
 0x2fa   : > { %v1145_v28 = vsub.f32 %v1079_v2, %v1139_v27 }
 0x2fc   : > { %v1151_v32 = vmul.f32 1.442695, %v1145_v28 }
 0x2fd   : > { %v1142_v30 = vpop.xlane.xlu0 %1141 }
 0x2fe   : > { %v1146_v31 = vsub.f32 %v1125_v3, %v1142_v30  ;;  %3250 = vpow2.f32 %v1151_v32 }
 0x300   : > { %v3247_v21 = vpop.eup %3246  ;;  %v1153_v33 = vmul.f32 1.442695, %v1146_v31 }
 0x301   : > { %v3249_v23 = vpop.eup %3248  ;;  %v1155_v24 = vsel %vm946_vm2, %v3247_v21, 0.0 }
 0x302   : > { %1156 = vadd.xlane.f32.xlu1 %v1155_v24  ;;  %v1158_v25 = vsel %vm946_vm2, %v3249_v23, 0.0  ;;  %3252 = vpow2.f32 %v1153_v33 }
 0x303   : > { %1159 = vadd.xlane.f32.xlu0 %v1158_v25 }
 0x308   : > { %v3677_v34 = vpop.eup %3250 }
 0x309   : > { %v1161_v36 = vsel %vm946_vm2, %v3677_v34, 0.0 }
 0x30c   : > { %v3679_v35 = vpop.eup %3252 }
 0x30d   : > { %v1164_v37 = vsel %vm946_vm2, %v3679_v35, 0.0 }
 0x313   : > { %794 = vrot.lane.b32.xlu1 %v3587_v26, %s4141_s16 }
 0x317   : > { %796 = vrot.lane.b32.xlu1 %v3577_v19, %s4141_s16 }
 0x319   : > { %792 = vrot.lane.b32.xlu0 %v3579_v20, %s4141_s16  ;;  %s4146_s16 = smov 24  }
 0x338   : > { %1162 = vadd.xlane.f32.xlu0 %v1161_v36 }
 0x33b   : > { %1165 = vadd.xlane.f32.xlu1 %v1164_v37 }
 0x38f   : > { %v1157_v39 = vpop.xlane.xlu1 %1156 }
 0x390   : > { %3254 = vrcp.f32 %v1157_v39  ;;  %v1160_v40 = vpop.xlane.xlu0 %1159 }
 0x391   : > { %3256 = vrcp.f32 %v1160_v40 }
 0x393   : > { %v795_v43 = vpop.permute.xlu1 %794 }
 0x394   : > { %v802_v44 = vcombine.low %v791_v38, %v795_v43  ;;  %v803_v45 = vcombine.high %v791_v38, %v795_v43  ;;  %v793_v46 = vpop.permute.xlu0 %792 }
 0x396   : > { %v810_v53 = vrot.slane %v802_v44, %v3581_v22  ;;  %v817_v54 = vrot.slane %v803_v45, %v3581_v22 }
 0x397   : > { %v797_v47 = vpop.permute.xlu1 %796 }
 0x398   : > { %v818_v48 = vcombine.low %v793_v46, %v797_v47  ;;  %v819_v49 = vcombine.high %v793_v46, %v797_v47 }
 0x39a   : > { %v3255_v50 = vpop.eup %3254  ;;  %v826_v55 = vrot.slane %v818_v48, %v3581_v22  ;;  %v833_v56 = vrot.slane %v819_v49, %v3581_v22 }
 0x39b   : > { %v3257_v57 = vpop.eup %3256  ;;  %v1168_v58 = vmul.f32 %v3255_v50, %v3247_v21 }
 0x39c   : > { %v1170_v59 = vmul.f32 %v3257_v57, %v3249_v23  ;;  %v834_v60 = vcombine.low %v810_v53, %v826_v55  ;;  %v835_v61 = vcombine.high %v810_v53, %v826_v55  ;;  %v850_v62 = vcombine.low %v817_v54, %v833_v56 }
 0x39d   : > { %2757 = vst.msk [vmem:[%s3695_s28] sm:$0xff] %vm946_vm2, %v1168_v58  ;;  %v851_v63 = vcombine.high %v817_v54, %v833_v56  ;;  %v1175_v39 = vpack.c.bf16 %v1168_v58, %v1168_v58 }
 0x39e   : > { %2758 = vst.msk [vmem:[%s3695_s28 + $0x8] sm:$0xff] %vm946_vm2, %v1170_v59  ;;  %v842_v0 = vrot.slane %v834_v60, %v3593_v29  ;;  %v849_v2 = vrot.slane %v835_v61, %v3593_v29  ;;  %v858_v3 = vrot.slane %v850_v62, %v3593_v29  ;;  %v1176_v40 = vpack.c.bf16 %v1170_v59, %v1170_v59 }
 0x39f   : > { %v865_v4 = vrot.slane %v851_v63, %v3593_v29 }
 0x3a0   : > { %v870_v5 = vcombine.low %v842_v0, %v849_v2  ;;  %v2955_v6 = vcombine.high %v842_v0, %v849_v2 }
 0x3a1   : > { %v886_v8 = vcombine.low %v858_v3, %v865_v4  ;;  %v2956_v9 = vcombine.high %v858_v3, %v865_v4 }
 0x3a2   : > { %v877_v10 = vrot.slane %v870_v5, %v3581_v22  ;;  %v885_v11 = vrot.slane %v2955_v6, %v3581_v22 }
 0x3a3   : > { %v893_v12 = vrot.slane %v886_v8, %v3581_v22  ;;  %v901_v13 = vrot.slane %v2956_v9, %v3581_v22 }
 0x3a4   : > { %v902_v14 = vcombine.low %v877_v10, %v885_v11  ;;  %v903_v15 = vcombine.high %v877_v10, %v885_v11 }
 0x3a5   : > { %v918_v16 = vcombine.low %v893_v12, %v901_v13  ;;  %v919_v17 = vcombine.high %v893_v12, %v901_v13 }
 0x3a6   : > { %v910_v18 = vrot.slane %v902_v14, %v3593_v29  ;;  %v917_v21 = vrot.slane %v903_v15, %v3593_v29 }
 0x3a7   : > { %v926_v23 = vrot.slane %v918_v16, %v3593_v29  ;;  %v933_v24 = vrot.slane %v919_v17, %v3593_v29 }
 0x3a9   : > { %v934_v25 = vcombine.low %v910_v18, %v926_v23  ;;  %v935_v27 = vcombine.high %v910_v18, %v926_v23  ;;  %v936_v28 = vcombine.low %v917_v21, %v933_v24  ;;  %v937_v30 = vcombine.high %v917_v21, %v933_v24 }
 0x3ab   : > { %v1179_v31 = vpack.c.bf16 %v934_v25, %v934_v25  ;;  %v1180_v32 = vpack.c.bf16 %v935_v27, %v935_v27  ;;  %v1181_v37 = vpack.c.bf16 %v936_v28, %v936_v28  ;;  %v1182_v38 = vpack.c.bf16 %v937_v30, %v937_v30 }
 0x3ad   : > { %v1188_v33 = vsel %vm1186_vm3, %v1179_v31, 0  ;;  %v1234_v36 = vsel %vm1186_vm3, %v1180_v32, 0  ;;  %v1280_v43 = vsel %vm1186_vm3, %v1181_v37, 0  ;;  %v1326_v44 = vsel %vm1186_vm3, %v1182_v38, 0 }
 0x3ae   : > { %3080 = vmatpush3.bf16.msra.mxu1 %v1188_v33  ;;  %3086 = vmatpush3.bf16.msra.mxu0 %v1234_v36  ;;  %v3241_v33 = vld [vmem:[%s4163_s4 + $0x8] sm:$0xff]  }
 0x3af   : > { %3091 = vmatprep.subr.bf16.mxu1 %v3403_v1  ;;  %3097 = vmatprep.subr.bf16.mxu0 %v3403_v1 }
 0x3b1   : > { %3082 = vmatmul.mubr.msk.bf16.vlgmr.msra.gmra.mrb[8].mxu1 %vm946_vm2, %v1175_v39  ;;  %3088 = vmatmul.mubr.msk.bf16.vlgmr.msra.gmra.mrb[12].mxu0 %vm946_vm2, %v1176_v40 }
 0x3b2   : > { %3092 = vmatpush3.bf16.msra.mxu1 %v1280_v43  ;;  %3098 = vmatpush3.bf16.msra.mxu0 %v1326_v44 }
 0x3b3   : > { %3093 = vmatprep.mubr.msk.bf16.mxu1 %vm3404_vm0, %v3403_v1  ;;  %3099 = vmatprep.mubr.msk.bf16.mxu0 %vm3404_vm0, %v3403_v1 }
 0x3b4   : > { %3103 = vmatprep.subr.bf16.mxu1 %v3403_v1  ;;  %3111 = vmatprep.subr.bf16.mxu0 %v3403_v1 }
 0x3c5   : > { %v1163_v45 = vpop.xlane.xlu0 %1162 }
 0x3c6   : > { %3258 = vrcp.f32 %v1163_v45 }
 0x3c8   : > { %v1166_v46 = vpop.xlane.xlu1 %1165 }
 0x3c9   : > { %3260 = vrcp.f32 %v1166_v46 }
 0x3d0   : > { %v3259_v47 = vpop.eup %3258 }
 0x3d1   : > { %v1172_v48 = vmul.f32 %v3259_v47, %v3677_v34 }
 0x3d3   : > { %v3261_v49 = vpop.eup %3260  ;;  %2759 = vst.msk [vmem:[%s3695_s28 + $0x10] sm:$0xff] %vm946_vm2, %v1172_v48  ;;  %v1177_v50 = vpack.c.bf16 %v1172_v48, %v1172_v48 }
 0x3d4   : > { %v1174_v53 = vmul.f32 %v3261_v49, %v3679_v35 }
 0x3d5   : > { %3094 = vmatmul.mubr.msk.bf16.vlgmr.msra.gmra.mrb[12].mxu1 %vm946_vm2, %v1177_v50 }
 0x3d6   : > { %2760 = vst.msk [vmem:[%s3695_s28 + $0x18] sm:$0xff] %vm946_vm2, %v1174_v53  ;;  %v1178_v54 = vpack.c.bf16 %v1174_v53, %v1174_v53  ;;  %3107 = vmatprep.mubr.msk.bf16.mxu1 %vm3404_vm0, %v3403_v1 }
 0x3d8   : > { %3100 = vmatmul.mubr.msk.bf16.vlgmr.msra.gmra.mrb[16].mxu0 %vm946_vm2, %v1178_v54 }
 0x3d9   : > { %3115 = vmatprep.mubr.msk.bf16.mxu0 %vm3404_vm0, %v3403_v1 }
 0x484   : > { %v1224_v34 = vpop.f32.mrb[8].mxu1  ;;  %v1270_v55 = vpop.f32.mrb[12].mxu0 }
 0x485   : > { %v3083_v56 = vpop.f32.mrb[9].mxu1  ;;  %v3089_v57 = vpop.f32.mrb[13].mxu0  ;;  %v1368_v62 = vadd.f32 %v1224_v34, %v3627_v41  ;;  %v1369_v8 = vadd.f32 %v1270_v55, %v3629_v42  ;;  %v3240_v42 = vld [vmem:[%s4163_s4] sm:$0xff]   ;;  %s3279_s4 = scalar_lea.vmem %s4006_s2, 512 }
 0x486   : > { %v1227_v58 = vpop.f32.mrb[10].mxu1  ;;  %v1273_v59 = vpop.f32.mrb[14].mxu0  ;;  %3104 = vmatpush3.bf16.msra.mxu1 %v3240_v42  ;;  %p3280_p11 = scmp.ne.s32.totalorder %s4006_s2, %s3279_s4 }
 0x487   : > { %v3084_v35 = vpop.f32.mrb[11].mxu1  ;;  %v3090_v60 = vpop.f32.mrb[15].mxu0  ;;  %3105 = vmatprep.subr.bf16.mxu1 %v3403_v1 }
 0x488   : > { %p3281_p12 = pnand %p3280_p11, %p3525_p5 }
 0x48a   : > { %3106 = vmatpush3.bf16.msra.mxu1 %v3241_v33  ;;  %p3282_p13 = pneg %p3281_p12 }
 0x48b   : > { %3119 = vmatprep.subr.bf16.mxu1 %v3403_v1 }
 0x4a8   : > { %v1316_v61 = vpop.f32.mrb[12].mxu1 }
 0x4a9   : > { %v1370_v63 = vadd.f32 %v1316_v61, %v3647_v51  ;;  %v3095_v0 = vpop.f32.mrb[13].mxu1  ;;  %v3242_v61 = vld [vmem:[%s4164_s6] sm:$0xff]  }
 0x4aa   : > { %v1319_v2 = vpop.f32.mrb[14].mxu1  ;;  %3112 = vmatpush3.bf16.msra.mxu0 %v3242_v61 }
 0x4ab   : > { %v1372_v3 = vcombine.low %v1368_v62, %v1370_v63  ;;  %v1373_v4 = vcombine.high %v1368_v62, %v1370_v63  ;;  %v3096_v5 = vpop.f32.mrb[15].mxu1  ;;  %v1362_v6 = vpop.f32.mrb[16].mxu0  ;;  %3113 = vmatprep.subr.bf16.mxu0 %v3403_v1  ;;  %v3243_v62 = vld [vmem:[%s4164_s6 + $0x8] sm:$0xff]   ;;  %v2967_v63 = vld [vmem:[%s4165_s5] ss:$0 sm:$0xff] }
 0x4ac   : > { %v1371_v9 = vadd.f32 %v1362_v6, %v3649_v52  ;;  %v3101_v10 = vpop.f32.mrb[17].mxu0 }
 0x4ad   : > { %v1365_v11 = vpop.f32.mrb[18].mxu0  ;;  %v1380_v15 = vrot.slane %v1372_v3, %v3581_v22  ;;  %v1387_v41 = vrot.slane %v1373_v4, %v3581_v22  ;;  %v2971_v10 = vld [vmem:[%s4133_s7] ss:$0 sm:$0xff] }
 0x4ae   : > { %v1388_v12 = vcombine.low %v1369_v8, %v1371_v9  ;;  %v1389_v13 = vcombine.high %v1369_v8, %v1371_v9  ;;  %v3102_v14 = vpop.f32.mrb[19].mxu0  ;;  %3114 = vmatpush3.bf16.msra.mxu0 %v3243_v62 }
 0x4af   : > { %3125 = vmatprep.subr.bf16.mxu0 %v3403_v1 }
 0x4b0   : > { %v1396_v51 = vrot.slane %v1388_v12, %v3581_v22  ;;  %v1403_v16 = vrot.slane %v1389_v13, %v3581_v22 }
 0x4b2   : > { %v1404_v17 = vcombine.low %v1380_v15, %v1396_v51  ;;  %v1405_v18 = vcombine.high %v1380_v15, %v1396_v51  ;;  %v1420_v21 = vcombine.low %v1387_v41, %v1403_v16  ;;  %v1421_v23 = vcombine.high %v1387_v41, %v1403_v16 }
 0x4b4   : > { %v1412_v52 = vrot.slane %v1404_v17, %v3593_v29  ;;  %v1419_v24 = vrot.slane %v1405_v18, %v3593_v29  ;;  %v1428_v25 = vrot.slane %v1420_v21, %v3593_v29  ;;  %v1435_v27 = vrot.slane %v1421_v23, %v3593_v29 }
 0x4b6   : > { %v1440_v28 = vcombine.low %v1412_v52, %v1419_v24  ;;  %v2965_v30 = vcombine.high %v1412_v52, %v1419_v24  ;;  %v1456_v31 = vcombine.low %v1428_v25, %v1435_v27  ;;  %v2966_v32 = vcombine.high %v1428_v25, %v1435_v27 }
 0x4b8   : > { %v1447_v36 = vrot.slane %v1440_v28, %v3581_v22  ;;  %v1455_v37 = vrot.slane %v2965_v30, %v3581_v22  ;;  %v1463_v38 = vrot.slane %v1456_v31, %v3581_v22  ;;  %v1471_v39 = vrot.slane %v2966_v32, %v3581_v22 }
 0x4ba   : > { %v1473_v40 = vcombine.high %v1447_v36, %v1455_v37  ;;  %v1489_v43 = vcombine.high %v1463_v38, %v1471_v39  ;;  %v1472_v44 = vcombine.low %v1447_v36, %v1455_v37  ;;  %v1488_v45 = vcombine.low %v1463_v38, %v1471_v39 }
 0x4bc   : > { %v1487_v46 = vrot.slane %v1473_v40, %v3593_v29  ;;  %v1503_v47 = vrot.slane %v1489_v43, %v3593_v29  ;;  %v1480_v48 = vrot.slane %v1472_v44, %v3593_v29  ;;  %v1496_v49 = vrot.slane %v1488_v45, %v3593_v29 }
 0x4be   : > { %v1506_v50 = vcombine.low %v1487_v46, %v1503_v47  ;;  %v1505_v53 = vcombine.high %v1480_v48, %v1496_v49  ;;  %v1507_v54 = vcombine.high %v1487_v46, %v1503_v47  ;;  %v1504_v34 = vcombine.low %v1480_v48, %v1496_v49 }
 0x4c0   : > { %1513 = vrot.lane.b32.xlu1 %v1506_v50, %s4147_s26  ;;  %1509 = vrot.lane.b32.xlu0 %v1505_v53, %s4144_s18  ;;  %s4169_s26 = smov 96   ;;  %s4170_s18 = sshll.u32 %s3686_s17, 5 }
 0x4c4   : > { %1517 = vrot.lane.b32.xlu0 %v1507_v54, %s4146_s16  ;;  %s3414_s16 = smov 64  }
 0x532   : > { %v1510_v55 = vpop.permute.xlu0 %1509  ;;  %v1514_v56 = vpop.permute.xlu1 %1513 }
 0x533   : > { %v1520_v57 = vsel %vm946_vm2, %v1504_v34, %v1510_v55 }
 0x534   : > { %v1522_v59 = vsel %vm1521_vm4, %v1520_v57, %v1514_v56 }
 0x536   : > { %v1518_v58 = vpop.permute.xlu0 %1517 }
 0x537   : > { %v1524_v35 = vsel %vm1523_vm5, %v1522_v59, %v1518_v58 }
 0x538   : > { %v1525_v60 = vpack.c.bf16 %v1524_v35, %v1524_v35 }
 0x53a   : > { %3108 = vmatmul.mubr.msk.bf16.vlgmr.msra.gmra.mrb[16].mxu1 %vm454_vm1, %v1525_v60 }
 0x53b   : > { %3121 = vmatprep.mubr.msk.bf16.mxu1 %vm3404_vm0, %v3403_v1 }
 0x60d   : > { %v1586_v0 = vpop.f32.mrb[16].mxu1 }
 0x60e   : > { %v1587_v2 = vadd.f32 %v2967_v63, %v1586_v0  ;;  %v3109_v3 = vpop.f32.mrb[17].mxu1 }
 0x60f   : > { %v1589_v4 = vpop.f32.mrb[18].mxu1 }
 0x610   : > { %v1592_v5 = vmax.f32 %v1587_v2, 0.0  ;;  %v3110_v6 = vpop.f32.mrb[19].mxu1 }
 0x612   : > { %v1593_v8 = vadd.f32 %v1592_v5, %v1524_v35 }
 0x614   : > { %v1594_v9 = vpack.c.bf16 %v1593_v8, %v1593_v8 }
 0x616   : > { %3116 = vmatmul.mubr.msk.bf16.vlgmr.msra.gmra.mrb[20].mxu0 %vm454_vm1, %v1594_v9 }
 0x617   : > { %3127 = vmatprep.mubr.msk.bf16.mxu0 %vm3404_vm0, %v3403_v1 }
 0x6e9   : > { %v1655_v11 = vpop.f32.mrb[20].mxu0 }
 0x6ea   : > { %v3793_v12 = vadd.f32 %v2971_v10, %v1655_v11  ;;  %v3117_v13 = vpop.f32.mrb[21].mxu0 }
 0x6eb   : > { %v1658_v14 = vpop.f32.mrb[22].mxu0 }
 0x6ec   : > { %1813 = vrot.lane.b32.xlu0 %v3793_v12, %s4166_s19  ;;  %1810 = vrot.lane.b32.xlu1 %v3793_v12, %s4167_s29  ;;  %v3118_v15 = vpop.f32.mrb[23].mxu0  ;;  %s3915_s19 = scalar_lea.vmem [#allocation6], %s4170_s18  ;;  %s4171_s18 = smov 16  }
 0x6ed   : > { %s4172_s29 = smov 8  }
 0x6f0   : > { %1661 = vrot.lane.b32.xlu0 %v3563_v7, %s3414_s16  ;;  %1816 = vrot.lane.b32.xlu1 %v3793_v12, %s4168_s20 }
 0x6f4   : > { %1665 = vrot.lane.b32.xlu0 %v3587_v26, %s3414_s16  ;;  %1663 = vrot.lane.b32.xlu1 %v3579_v20, %s3414_s16 }
 0x6f8   : > { %1667 = vrot.lane.b32.xlu1 %v3577_v19, %s3414_s16  ;;  %s4173_s16 = smov 24  }
 0x75e   : > { %v3805_v41 = vpop.permute.xlu0 %1813  ;;  %v3807_v51 = vpop.permute.xlu1 %1810 }
 0x75f   : > { %v1819_v16 = vcombine.low %v3793_v12, %v3805_v41  ;;  %v1820_v17 = vcombine.high %v3793_v12, %v3805_v41 }
 0x761   : > { %v1827_v19 = vrot.slane %v1819_v16, %v3581_v22  ;;  %v1834_v21 = vrot.slane %v1820_v17, %v3581_v22 }
 0x762   : > { %v1662_v7 = vpop.permute.xlu0 %1661  ;;  %v3813_v18 = vpop.permute.xlu1 %1816 }
 0x763   : > { %v1835_v26 = vcombine.low %v3807_v51, %v3813_v18  ;;  %v1836_v20 = vcombine.high %v3807_v51, %v3813_v18 }
 0x765   : > { %v1843_v23 = vrot.slane %v1835_v26, %v3581_v22  ;;  %v1850_v42 = vrot.slane %v1836_v20, %v3581_v22 }
 0x766   : > { %v1664_v52 = vpop.permute.xlu1 %1663  ;;  %v1666_v30 = vpop.permute.xlu0 %1665 }
 0x767   : > { %v1851_v24 = vcombine.low %v1827_v19, %v1843_v23  ;;  %v1852_v25 = vcombine.high %v1827_v19, %v1843_v23  ;;  %v1867_v27 = vcombine.low %v1834_v21, %v1850_v42  ;;  %v1868_v28 = vcombine.high %v1834_v21, %v1850_v42 }
 0x768   : > { %v1673_v37 = vcombine.low %v1662_v7, %v1666_v30  ;;  %v1674_v38 = vcombine.high %v1662_v7, %v1666_v30 }
 0x769   : > { %v1859_v31 = vrot.slane %v1851_v24, %v3593_v29  ;;  %v1866_v32 = vrot.slane %v1852_v25, %v3593_v29  ;;  %v1875_v33 = vrot.slane %v1867_v27, %v3593_v29  ;;  %v1882_v36 = vrot.slane %v1868_v28, %v3593_v29 }
 0x76a   : > { %v1668_v39 = vpop.permute.xlu1 %1667  ;;  %v1681_v54 = vrot.slane %v1673_v37, %v3581_v22  ;;  %v1688_v34 = vrot.slane %v1674_v38, %v3581_v22 }
 0x76b   : > { %v1887_v40 = vcombine.low %v1859_v31, %v1866_v32  ;;  %v2977_v43 = vcombine.high %v1859_v31, %v1866_v32  ;;  %v1903_v44 = vcombine.low %v1875_v33, %v1882_v36  ;;  %v2978_v45 = vcombine.high %v1875_v33, %v1882_v36 }
 0x76c   : > { %v1689_v46 = vcombine.low %v1664_v52, %v1668_v39  ;;  %v1690_v47 = vcombine.high %v1664_v52, %v1668_v39 }
 0x76d   : > { %v1894_v48 = vrot.slane %v1887_v40, %v3581_v22  ;;  %v1902_v49 = vrot.slane %v2977_v43, %v3581_v22  ;;  %v1910_v50 = vrot.slane %v1903_v44, %v3581_v22  ;;  %v1918_v53 = vrot.slane %v2978_v45, %v3581_v22 }
 0x76e   : > { %v1697_v55 = vrot.slane %v1689_v46, %v3581_v22  ;;  %v1704_v56 = vrot.slane %v1690_v47, %v3581_v22 }
 0x76f   : > { %v1919_v57 = vcombine.low %v1894_v48, %v1902_v49  ;;  %v1935_v58 = vcombine.low %v1910_v50, %v1918_v53  ;;  %v1920_v59 = vcombine.high %v1894_v48, %v1902_v49  ;;  %v1936_v35 = vcombine.high %v1910_v50, %v1918_v53 }
 0x770   : > { %v1705_v60 = vcombine.low %v1681_v54, %v1697_v55  ;;  %v1706_v61 = vcombine.high %v1681_v54, %v1697_v55  ;;  %v1721_v62 = vcombine.low %v1688_v34, %v1704_v56  ;;  %v1722_v63 = vcombine.high %v1688_v34, %v1704_v56 }
 0x771   : > { %v1927_v0 = vrot.slane %v1919_v57, %v3593_v29  ;;  %v1943_v2 = vrot.slane %v1935_v58, %v3593_v29  ;;  %v1934_v10 = vrot.slane %v1920_v59, %v3593_v29  ;;  %v1950_v11 = vrot.slane %v1936_v35, %v3593_v29 }
 0x772   : > { %v1713_v3 = vrot.slane %v1705_v60, %v3593_v29  ;;  %v1720_v4 = vrot.slane %v1706_v61, %v3593_v29  ;;  %v1729_v5 = vrot.slane %v1721_v62, %v3593_v29  ;;  %v1736_v6 = vrot.slane %v1722_v63, %v3593_v29 }
 0x773   : > { %v1951_v8 = vcombine.low %v1927_v0, %v1943_v2  ;;  %v1952_v9 = vcombine.high %v1927_v0, %v1943_v2  ;;  %v1953_v25 = vcombine.low %v1934_v10, %v1950_v11  ;;  %v1954_v27 = vcombine.high %v1934_v10, %v1950_v11 }
 0x774   : > { %v1741_v13 = vcombine.low %v1713_v3, %v1720_v4  ;;  %v2975_v14 = vcombine.high %v1713_v3, %v1720_v4  ;;  %v1757_v15 = vcombine.low %v1729_v5, %v1736_v6  ;;  %v2976_v16 = vcombine.high %v1729_v5, %v1736_v6 }
 0x775   : > { %v2107_v17 = vpack.c.bf16 %v1951_v8, %v1951_v8  ;;  %v2108_v7 = vpack.c.bf16 %v1952_v9, %v1952_v9  ;;  %v2109_v37 = vpack.c.bf16 %v1953_v25, %v1953_v25  ;;  %v2110_v38 = vpack.c.bf16 %v1954_v27, %v1954_v27 }
 0x776   : > { %v1748_v26 = vrot.slane %v1741_v13, %v3581_v22  ;;  %v1756_v20 = vrot.slane %v2975_v14, %v3581_v22  ;;  %v1764_v19 = vrot.slane %v1757_v15, %v3581_v22  ;;  %v1772_v21 = vrot.slane %v2976_v16, %v3581_v22 }
 0x777   : > { %v2115_v23 = vsel %vm946_vm2, %v2107_v17, 0  ;;  %v2161_v42 = vsel %vm946_vm2, %v2108_v7, 0  ;;  %v2207_v45 = vsel %vm946_vm2, %v2109_v37, 0  ;;  %v2253_v46 = vsel %vm946_vm2, %v2110_v38, 0 }
 0x778   : > { %v1773_v52 = vcombine.low %v1748_v26, %v1756_v20  ;;  %v1789_v24 = vcombine.low %v1764_v19, %v1772_v21  ;;  %3120 = vmatpush3.bf16.xpose.msra.mxu1 %v2115_v23  ;;  %3126 = vmatpush3.bf16.xpose.msra.mxu0 %v2161_v42  ;;  %v1774_v28 = vcombine.high %v1748_v26, %v1756_v20 }
 0x779   : > { %3131 = vmatprep.subr.bf16.mxu1 %v3403_v1  ;;  %v1790_v31 = vcombine.high %v1764_v19, %v1772_v21  ;;  %3137 = vmatprep.subr.bf16.mxu0 %v3403_v1 }
 0x77a   : > { %v1781_v30 = vrot.slane %v1773_v52, %v3593_v29  ;;  %v1797_v32 = vrot.slane %v1789_v24, %v3593_v29  ;;  %v1788_v39 = vrot.slane %v1774_v28, %v3593_v29 }
 0x77b   : > { %v1804_v40 = vrot.slane %v1790_v31, %v3593_v29 }
 0x77c   : > { %v3853_v33 = vcombine.low %v1781_v30, %v1797_v32  ;;  %v3855_v36 = vcombine.high %v1781_v30, %v1797_v32 }
 0x77d   : > { %v3871_v47 = vcombine.low %v1788_v39, %v1804_v40  ;;  %v3873_v48 = vcombine.high %v1788_v39, %v1804_v40 }
 0x77e   : > { %v2103_v43 = vpack.c.bf16 %v3853_v33, %v3853_v33  ;;  %v2104_v44 = vpack.c.bf16 %v3855_v36, %v3855_v36 }
 0x77f   : > { %v2105_v49 = vpack.c.bf16 %v3871_v47, %v3871_v47  ;;  %v2106_v50 = vpack.c.bf16 %v3873_v48, %v3873_v48 }
 0x780   : > { %3122 = vmatmul.mubr.msk.bf16.vlgmr.msra.gmra.mrb[20].mxu1 %vm946_vm2, %v2103_v43  ;;  %3128 = vmatmul.mubr.msk.bf16.vlgmr.msra.gmra.mrb[24].mxu0 %vm946_vm2, %v2104_v44 }
 0x781   : > { %3132 = vmatpush3.bf16.xpose.msra.mxu1 %v2207_v45  ;;  %3138 = vmatpush3.bf16.xpose.msra.mxu0 %v2253_v46 }
 0x782   : > { %3133 = vmatprep.mubr.msk.bf16.mxu1 %vm3404_vm0, %v3403_v1  ;;  %3139 = vmatprep.mubr.msk.bf16.mxu0 %vm3404_vm0, %v3403_v1 }
 0x783   : > { %3143 = vmatprep.subr.bf16.mxu1 %v3403_v1  ;;  %3149 = vmatprep.subr.bf16.mxu0 %v3403_v1 }
 0x788   : > { %3134 = vmatmul.mubr.msk.bf16.vlgmr.msra.gmra.mrb[24].mxu1 %vm946_vm2, %v2105_v49  ;;  %3140 = vmatmul.mubr.msk.bf16.vlgmr.msra.gmra.mrb[28].mxu0 %vm946_vm2, %v2106_v50 }
 0x789   : > { %3145 = vmatprep.mubr.msk.bf16.mxu1 %vm3404_vm0, %v3403_v1  ;;  %3151 = vmatprep.mubr.msk.bf16.mxu0 %vm3404_vm0, %v3403_v1 }
 0x853   : > { %v2151_v53 = vpop.f32.mrb[20].mxu1  ;;  %v2197_v54 = vpop.f32.mrb[24].mxu0 }
 0x854   : > { %v3123_v34 = vpop.f32.mrb[21].mxu1  ;;  %v3129_v55 = vpop.f32.mrb[25].mxu0  ;;  %v2295_v56 = vsel %vm946_vm2, %v2151_v53, -inf  ;;  %v2298_v57 = vsel %vm946_vm2, %v2197_v54, -inf }
 0x855   : > { %2296 = vmax.xlane.f32.xlu0 %v2295_v56  ;;  %v2154_v58 = vpop.f32.mrb[22].mxu1  ;;  %2299 = vmax.xlane.f32.xlu1 %v2298_v57  ;;  %v2200_v59 = vpop.f32.mrb[26].mxu0 }
 0x856   : > { %v3124_v35 = vpop.f32.mrb[23].mxu1  ;;  %v3130_v60 = vpop.f32.mrb[27].mxu0 }
 0x85b   : > { %v2243_v61 = vpop.f32.mrb[24].mxu1  ;;  %v2289_v62 = vpop.f32.mrb[28].mxu0 }
 0x85c   : > { %v3135_v63 = vpop.f32.mrb[25].mxu1  ;;  %v3141_v0 = vpop.f32.mrb[29].mxu0  ;;  %v2301_v2 = vsel %vm946_vm2, %v2243_v61, -inf  ;;  %v2304_v8 = vsel %vm946_vm2, %v2289_v62, -inf }
 0x85d   : > { %2302 = vmax.xlane.f32.xlu0 %v2301_v2  ;;  %v2246_v3 = vpop.f32.mrb[26].mxu1  ;;  %v2292_v4 = vpop.f32.mrb[30].mxu0 }
 0x85e   : > { %v3136_v5 = vpop.f32.mrb[27].mxu1  ;;  %v3142_v6 = vpop.f32.mrb[31].mxu0 }
 0x861   : > { %2305 = vmax.xlane.f32.xlu0 %v2304_v8 }
 0x866   : > { %1955 = vrot.lane.b32.xlu1 %v3793_v12, %s4169_s26 }
 0x8e2   : > { %v2297_v9 = vpop.xlane.xlu0 %2296  ;;  %v2300_v10 = vpop.xlane.xlu1 %2299 }
 0x8e3   : > { %v2307_v11 = vsub.f32 %v2151_v53, %v2297_v9  ;;  %v2308_v13 = vsub.f32 %v2197_v54, %v2300_v10 }
 0x8e5   : > { %v2311_v14 = vmul.f32 1.442695, %v2307_v11  ;;  %v2313_v15 = vmul.f32 1.442695, %v2308_v13 }
 0x8e7   : > { %3262 = vpow2.f32 %v2311_v14 }
 0x8e8   : > { %3264 = vpow2.f32 %v2313_v15 }
 0x8ea   : > { %v2303_v12 = vpop.xlane.xlu0 %2302 }
 0x8eb   : > { %v2309_v20 = vsub.f32 %v2243_v61, %v2303_v12 }
 0x8ed   : > { %v2315_v23 = vmul.f32 1.442695, %v2309_v20 }
 0x8ee   : > { %v2306_v19 = vpop.xlane.xlu0 %2305 }
 0x8ef   : > { %v2310_v21 = vsub.f32 %v2289_v62, %v2306_v19  ;;  %3266 = vpow2.f32 %v2315_v23 }
 0x8f1   : > { %v3263_v16 = vpop.eup %3262  ;;  %v2317_v42 = vmul.f32 1.442695, %v2310_v21 }
 0x8f2   : > { %v3265_v17 = vpop.eup %3264  ;;  %v2319_v7 = vsel %vm946_vm2, %v3263_v16, 0.0 }
 0x8f3   : > { %2320 = vadd.xlane.f32.xlu1 %v2319_v7  ;;  %v2322_v26 = vsel %vm946_vm2, %v3265_v17, 0.0  ;;  %3268 = vpow2.f32 %v2317_v42 }
 0x8f4   : > { %2323 = vadd.xlane.f32.xlu0 %v2322_v26 }
 0x8f9   : > { %v3901_v52 = vpop.eup %3266 }
 0x8fd   : > { %v3903_v24 = vpop.eup %3268 }
 0x904   : > { %1959 = vrot.lane.b32.xlu1 %v3805_v41, %s4169_s26  ;;  %v2325_v41 = vsel %vm946_vm2, %v3901_v52, 0.0 }
 0x908   : > { %1961 = vrot.lane.b32.xlu1 %v3813_v18, %s4169_s26  ;;  %v2328_v18 = vsel %vm946_vm2, %v3903_v24, 0.0 }
 0x90a   : > { %1957 = vrot.lane.b32.xlu0 %v3807_v51, %s4169_s26  ;;  %v1956_v51 = vpop.permute.xlu1 %1955  ;;  %s2770_s26 = sand.u32 1, %s3506_s25  }
 0x90b   : > { %s4008_s3 = scalar_lea.sflag [#allocation5], %s2770_s26 }
 0x929   : > { %2326 = vadd.xlane.f32.xlu0 %v2325_v41 }
 0x92c   : > { %2329 = vadd.xlane.f32.xlu1 %v2328_v18 }
 0x980   : > { %v2321_v25 = vpop.xlane.xlu1 %2320 }
 0x981   : > { %3270 = vrcp.f32 %v2321_v25  ;;  %v2324_v27 = vpop.xlane.xlu0 %2323 }
 0x982   : > { %3272 = vrcp.f32 %v2324_v27 }
 0x984   : > { %v1960_v28 = vpop.permute.xlu1 %1959 }
 0x985   : > { %v1967_v30 = vcombine.low %v1956_v51, %v1960_v28  ;;  %v1968_v31 = vcombine.high %v1956_v51, %v1960_v28  ;;  %v1958_v32 = vpop.permute.xlu0 %1957 }
 0x987   : > { %v1975_v43 = vrot.slane %v1967_v30, %v3581_v22  ;;  %v1982_v44 = vrot.slane %v1968_v31, %v3581_v22 }
 0x988   : > { %v1962_v37 = vpop.permute.xlu1 %1961 }
 0x989   : > { %v1983_v38 = vcombine.low %v1958_v32, %v1962_v37  ;;  %v1984_v39 = vcombine.high %v1958_v32, %v1962_v37 }
 0x98b   : > { %v3271_v40 = vpop.eup %3270  ;;  %v1991_v45 = vrot.slane %v1983_v38, %v3581_v22  ;;  %v1998_v46 = vrot.slane %v1984_v39, %v3581_v22 }
 0x98c   : > { %v3273_v49 = vpop.eup %3272  ;;  %v2332_v50 = vmul.f32 %v3271_v40, %v3263_v16 }
 0x98d   : > { %v2334_v53 = vmul.f32 %v3273_v49, %v3265_v17  ;;  %v1999_v54 = vcombine.low %v1975_v43, %v1991_v45  ;;  %v2000_v34 = vcombine.high %v1975_v43, %v1991_v45  ;;  %v2015_v55 = vcombine.low %v1982_v44, %v1998_v46 }
 0x98e   : > { %2761 = vst.msk [vmem:[%s3915_s19] sm:$0xff] %vm946_vm2, %v2332_v50  ;;  %v2016_v56 = vcombine.high %v1982_v44, %v1998_v46  ;;  %v2339_v42 = vpack.c.bf16 %v2332_v50, %v2332_v50 }
 0x98f   : > { %2762 = vst.msk [vmem:[%s3915_s19 + $0x8] sm:$0xff] %vm946_vm2, %v2334_v53  ;;  %v2007_v57 = vrot.slane %v1999_v54, %v3593_v29  ;;  %v2014_v58 = vrot.slane %v2000_v34, %v3593_v29  ;;  %v2023_v59 = vrot.slane %v2015_v55, %v3593_v29  ;;  %v2340_v41 = vpack.c.bf16 %v2334_v53, %v2334_v53 }
 0x990   : > { %v2030_v35 = vrot.slane %v2016_v56, %v3593_v29 }
 0x991   : > { %v2035_v60 = vcombine.low %v2007_v57, %v2014_v58  ;;  %v2979_v61 = vcombine.high %v2007_v57, %v2014_v58 }
 0x992   : > { %v2051_v62 = vcombine.low %v2023_v59, %v2030_v35  ;;  %v2980_v63 = vcombine.high %v2023_v59, %v2030_v35 }
 0x993   : > { %v2042_v0 = vrot.slane %v2035_v60, %v3581_v22  ;;  %v2050_v2 = vrot.slane %v2979_v61, %v3581_v22 }
 0x994   : > { %v2058_v3 = vrot.slane %v2051_v62, %v3581_v22  ;;  %v2066_v4 = vrot.slane %v2980_v63, %v3581_v22 }
 0x995   : > { %v2067_v5 = vcombine.low %v2042_v0, %v2050_v2  ;;  %v2068_v6 = vcombine.high %v2042_v0, %v2050_v2 }
 0x996   : > { %v2083_v8 = vcombine.low %v2058_v3, %v2066_v4  ;;  %v2084_v9 = vcombine.high %v2058_v3, %v2066_v4 }
 0x997   : > { %v2075_v10 = vrot.slane %v2067_v5, %v3593_v29  ;;  %v2082_v11 = vrot.slane %v2068_v6, %v3593_v29 }
 0x998   : > { %v2091_v13 = vrot.slane %v2083_v8, %v3593_v29  ;;  %v2098_v14 = vrot.slane %v2084_v9, %v3593_v29 }
 0x99a   : > { %v2099_v15 = vcombine.low %v2075_v10, %v2091_v13  ;;  %v2100_v16 = vcombine.high %v2075_v10, %v2091_v13  ;;  %v2101_v17 = vcombine.low %v2082_v11, %v2098_v14  ;;  %v2102_v7 = vcombine.high %v2082_v11, %v2098_v14 }
 0x99c   : > { %v2343_v26 = vpack.c.bf16 %v2099_v15, %v2099_v15  ;;  %v2344_v12 = vpack.c.bf16 %v2100_v16, %v2100_v16  ;;  %v2345_v21 = vpack.c.bf16 %v2101_v17, %v2101_v17  ;;  %v2346_v23 = vpack.c.bf16 %v2102_v7, %v2102_v7  ;;  %v3245_v17 = vld [vmem:[%s4134_s8 + $0x8] sm:$0xff]  }
 0x99e   : > { %v2351_v20 = vsel %vm1186_vm3, %v2343_v26, 0  ;;  %v2397_v19 = vsel %vm1186_vm3, %v2344_v12, 0  ;;  %v2443_v18 = vsel %vm1186_vm3, %v2345_v21, 0  ;;  %v2489_v51 = vsel %vm1186_vm3, %v2346_v23, 0 }
 0x99f   : > { %3144 = vmatpush3.bf16.msra.mxu1 %v2351_v20  ;;  %3150 = vmatpush3.bf16.msra.mxu0 %v2397_v19 }
 0x9a0   : > { %3155 = vmatprep.subr.bf16.mxu1 %v3403_v1  ;;  %3161 = vmatprep.subr.bf16.mxu0 %v3403_v1 }
 0x9a2   : > { %3146 = vmatmul.mubr.msk.bf16.vlgmr.msra.gmra.mrb[28].mxu1 %vm946_vm2, %v2339_v42  ;;  %3152 = vmatmul.mubr.msk.bf16.vlgmr.msra.gmra.mrb[32].mxu0 %vm946_vm2, %v2340_v41 }
 0x9a3   : > { %3156 = vmatpush3.bf16.msra.mxu1 %v2443_v18  ;;  %3162 = vmatpush3.bf16.msra.mxu0 %v2489_v51 }
 0x9a4   : > { %3157 = vmatprep.mubr.msk.bf16.mxu1 %vm3404_vm0, %v3403_v1  ;;  %3163 = vmatprep.mubr.msk.bf16.mxu0 %vm3404_vm0, %v3403_v1 }
 0x9a5   : > { %3167 = vmatprep.subr.bf16.mxu1 %v3403_v1 }
 0x9b6   : > { %v2327_v25 = vpop.xlane.xlu0 %2326 }
 0x9b7   : > { %3274 = vrcp.f32 %v2327_v25 }
 0x9b9   : > { %v2330_v27 = vpop.xlane.xlu1 %2329 }
 0x9ba   : > { %3276 = vrcp.f32 %v2330_v27 }
 0x9c1   : > { %v3275_v28 = vpop.eup %3274 }
 0x9c2   : > { %v2336_v30 = vmul.f32 %v3275_v28, %v3901_v52 }
 0x9c4   : > { %v3277_v31 = vpop.eup %3276  ;;  %2763 = vst.msk [vmem:[%s3915_s19 + $0x10] sm:$0xff] %vm946_vm2, %v2336_v30  ;;  %v2341_v32 = vpack.c.bf16 %v2336_v30, %v2336_v30 }
 0x9c5   : > { %v2338_v37 = vmul.f32 %v3277_v31, %v3903_v24 }
 0x9c6   : > { %3158 = vmatmul.mubr.msk.bf16.vlgmr.msra.gmra.mrb[32].mxu1 %vm946_vm2, %v2341_v32 }
 0x9c7   : > { %2764 = vst.msk [vmem:[%s3915_s19 + $0x18] sm:$0xff] %vm946_vm2, %v2338_v37  ;;  %v2342_v38 = vpack.c.bf16 %v2338_v37, %v2338_v37  ;;  %3171 = vmatprep.mubr.msk.bf16.mxu1 %vm3404_vm0, %v3403_v1 }
 0x9c9   : > { %3164 = vmatmul.mubr.msk.bf16.vlgmr.msra.gmra.mrb[36].mxu0 %vm946_vm2, %v2342_v38 }
 0xa75   : > { %v2387_v39 = vpop.f32.mrb[28].mxu1  ;;  %v2433_v40 = vpop.f32.mrb[32].mxu0 }
 0xa76   : > { %v3147_v43 = vpop.f32.mrb[29].mxu1  ;;  %v3153_v52 = vpop.f32.mrb[33].mxu0  ;;  %v2531_v24 = vadd.f32 %v2387_v39, %v3853_v33  ;;  %v2532_v59 = vadd.f32 %v2433_v40, %v3855_v36  ;;  %v3244_v36 = vld [vmem:[%s4134_s8] sm:$0xff]  }
 0xa77   : > { %v2390_v44 = vpop.f32.mrb[30].mxu1  ;;  %v2436_v45 = vpop.f32.mrb[34].mxu0  ;;  %3168 = vmatpush3.bf16.msra.mxu1 %v3244_v36 }
 0xa78   : > { %v3148_v46 = vpop.f32.mrb[31].mxu1  ;;  %v3154_v49 = vpop.f32.mrb[35].mxu0  ;;  %3169 = vmatprep.subr.bf16.mxu1 %v3403_v1 }
 0xa7b   : > { %3170 = vmatpush3.bf16.msra.mxu1 %v3245_v17 }
 0xa99   : > { %v2479_v50 = vpop.f32.mrb[32].mxu1 }
 0xa9a   : > { %v2533_v53 = vadd.f32 %v2479_v50, %v3871_v47  ;;  %v3159_v54 = vpop.f32.mrb[33].mxu1 }
 0xa9b   : > { %v2482_v34 = vpop.f32.mrb[34].mxu1 }
 0xa9c   : > { %v2535_v55 = vcombine.low %v2531_v24, %v2533_v53  ;;  %v2536_v56 = vcombine.high %v2531_v24, %v2533_v53  ;;  %v3160_v57 = vpop.f32.mrb[35].mxu1  ;;  %v2525_v58 = vpop.f32.mrb[36].mxu0 }
 0xa9d   : > { %v2534_v35 = vadd.f32 %v2525_v58, %v3873_v48  ;;  %v3165_v60 = vpop.f32.mrb[37].mxu0 }
 0xa9e   : > { %v2528_v61 = vpop.f32.mrb[38].mxu0  ;;  %v2543_v2 = vrot.slane %v2535_v55, %v3581_v22  ;;  %v2550_v33 = vrot.slane %v2536_v56, %v3581_v22 }
 0xa9f   : > { %v2551_v62 = vcombine.low %v2532_v59, %v2534_v35  ;;  %v2552_v63 = vcombine.high %v2532_v59, %v2534_v35  ;;  %v3166_v0 = vpop.f32.mrb[39].mxu0 }
 0xaa1   : > { %v2559_v47 = vrot.slane %v2551_v62, %v3581_v22  ;;  %v2566_v3 = vrot.slane %v2552_v63, %v3581_v22 }
 0xaa3   : > { %v2567_v4 = vcombine.low %v2543_v2, %v2559_v47  ;;  %v2568_v5 = vcombine.high %v2543_v2, %v2559_v47  ;;  %v2583_v6 = vcombine.low %v2550_v33, %v2566_v3  ;;  %v2584_v8 = vcombine.high %v2550_v33, %v2566_v3 }
 0xaa5   : > { %v2575_v48 = vrot.slane %v2567_v4, %v3593_v29  ;;  %v2582_v9 = vrot.slane %v2568_v5, %v3593_v29  ;;  %v2591_v10 = vrot.slane %v2583_v6, %v3593_v29  ;;  %v2598_v11 = vrot.slane %v2584_v8, %v3593_v29 }
 0xaa7   : > { %v2603_v13 = vcombine.low %v2575_v48, %v2582_v9  ;;  %v2989_v14 = vcombine.high %v2575_v48, %v2582_v9  ;;  %v2619_v15 = vcombine.low %v2591_v10, %v2598_v11  ;;  %v2990_v16 = vcombine.high %v2591_v10, %v2598_v11 }
 0xaa9   : > { %v2610_v7 = vrot.slane %v2603_v13, %v3581_v22  ;;  %v2618_v26 = vrot.slane %v2989_v14, %v3581_v22  ;;  %v2626_v12 = vrot.slane %v2619_v15, %v3581_v22  ;;  %v2634_v20 = vrot.slane %v2990_v16, %v3581_v22 }
 0xaab   : > { %v2636_v19 = vcombine.high %v2610_v7, %v2618_v26  ;;  %v2652_v21 = vcombine.high %v2626_v12, %v2634_v20  ;;  %v2635_v1 = vcombine.low %v2610_v7, %v2618_v26  ;;  %v2651_v23 = vcombine.low %v2626_v12, %v2634_v20 }
 0xaad   : > { %v2650_v42 = vrot.slane %v2636_v19, %v3593_v29  ;;  %v2666_v41 = vrot.slane %v2652_v21, %v3593_v29  ;;  %v2643_v18 = vrot.slane %v2635_v1, %v3593_v29  ;;  %v2659_v51 = vrot.slane %v2651_v23, %v3593_v29 }
 0xaaf   : > { %v2669_v25 = vcombine.low %v2650_v42, %v2666_v41  ;;  %v2668_v27 = vcombine.high %v2643_v18, %v2659_v51  ;;  %v2670_v28 = vcombine.high %v2650_v42, %v2666_v41  ;;  %v2667_v22 = vcombine.low %v2643_v18, %v2659_v51 }
 0xab1   : > { %2676 = vrot.lane.b32.xlu1 %v2669_v25, %s4171_s18  ;;  %2672 = vrot.lane.b32.xlu0 %v2668_v27, %s4172_s29  ;;  %s3997_s18 = sshll.u32 %s3506_s25, 7  ;;  %s3415_s25 = smov [#allocation4]  }
 0xab2   : > { %s4003_s1 = scalar_lea.hbm %s4137_s11, %s3997_s18  ;;  %s3283_s20 = sshll.u32 %s3415_s25, 4  ;;  %s3284_s20 = int_to_ptr.vmem [resolvable:$false] %s3283_s20 }
 0xab3   : > { %s3285_s5 = scalar_lea.vmem %s3284_s20, 1024  ;;  %p3286_p0 = scmp.lt.s32.totalorder %s4006_s2, %s3284_s20 }
 0xab4   : > { %p3287_p1 = scmp.lt.s32.totalorder %s3285_s5, %s3279_s4 }
 0xab5   : > { %2680 = vrot.lane.b32.xlu0 %v2670_v28, %s4173_s16 }
 0xab6   : > { %p3288_p2 = por %p3287_p1, %p3286_p0 }
 0xab8   : > { %p3289_p3 = pnand %p3288_p2, %p3282_p13 }
 0xb23   : > { %v2673_v30 = vpop.permute.xlu0 %2672  ;;  %v2677_v31 = vpop.permute.xlu1 %2676 }
 0xb24   : > { %v2683_v32 = vsel %vm946_vm2, %v2667_v22, %v2673_v30 }
 0xb25   : > { %v2684_v37 = vsel %vm1521_vm4, %v2683_v32, %v2677_v31 }
 0xb27   : > { %v2681_v29 = vpop.permute.xlu0 %2680 }
 0xb28   : > { %v3989_v38 = vsel %vm1523_vm5, %v2684_v37, %v2681_v29 }
 0xb29   : > { %v2686_v39 = vpack.c.bf16 %v3989_v38, %v3989_v38 }
 0xb2b   : > { %3172 = vmatmul.mubr.msk.bf16.vlgmr.msra.gmra.mrb[36].mxu1 %vm454_vm1, %v2686_v39 }
 0xb2c   : > { %3292 = shalt.err (!%p3289_p3)
}
 0xb2d   : > { %s3293_s0 = scalar_lea.hbm %s4003_s1, 512  ;;  %s3297_s16 = scalar_lea.hbm %s4137_s11, 1024 }
 0xb2e   : > { %p3294_p4 = scmp.ne.s32.totalorder %s4003_s1, %s3293_s0  ;;  %p3298_p9 = scmp.lt.u32.totalorder %s4003_s1, %s4137_s11 }
 0xb2f   : > { %p3299_p10 = scmp.lt.u32.totalorder %s3297_s16, %s3293_s0  ;;  %p3301_p12 = scmp.lt.u32.totalorder %s3293_s0, %s4003_s1 }
 0xb30   : > { %p3295_p7 = pnand %p3294_p4, %p3525_p5 }
 0xb31   : > { %p3300_p11 = por %p3299_p10, %p3298_p9 }
 0xb32   : > { %p3296_p8 = pneg %p3295_p7 }
 0xb33   : > { %p3302_p13 = por %p3301_p12, %p3300_p11 }
 0xb35   : > { %p3303_p0 = pnand %p3302_p13, %p3296_p8 }
 0xb37   : > { %3306 = shalt.err (!%p3303_p0)
}
 0xb38   : > { %s3416_s4 = smov 128   ;;  %s3417_s5 = smov 256  }
 0xb39   : > { %3176 = dma.vmem_to_hbm [thread:$0]  (%p3525_p5), %s4006_s2, 512, %s4003_s1, %s4008_s3, %s3416_s4, %s3417_s5, %s4172_s29  }
 0xb3a   : > { %s4174_s28 = sshll.u32 %s3915_s19, 4  ;;  %s4043_s16 = scalar_lea.hbm %s4138_s12, %s3997_s18  ;;  %s4037_s28 = int_to_ptr.vmem [resolvable:$true] %s4174_s28 }
 0xb3b   : > { %s3307_s25 = scalar_lea.vmem %s4037_s28, 512  ;;  %s3418_s20 = smov [#allocation6]  }
 0xb3c   : > { %p3308_p1 = scmp.ne.s32.totalorder %s4037_s28, %s3307_s25  ;;  %s3311_s6 = sshll.u32 %s3418_s20, 4  ;;  %s3312_s6 = int_to_ptr.vmem [resolvable:$false] %s3311_s6 }
 0xb3d   : > { %s3313_s1 = scalar_lea.vmem %s3312_s6, 1024  ;;  %p3314_p4 = scmp.lt.s32.totalorder %s4037_s28, %s3312_s6 }
 0xb3e   : > { %p3309_p2 = pnand %p3308_p1, %p3525_p5  ;;  %p3315_p7 = scmp.lt.s32.totalorder %s3313_s1, %s3307_s25 }
 0xb40   : > { %p3310_p3 = pneg %p3309_p2  ;;  %p3316_p8 = por %p3315_p7, %p3314_p4 }
 0xb42   : > { %p3317_p9 = pnand %p3316_p8, %p3310_p3 }
 0xb44   : > { %3320 = shalt.err (!%p3317_p9)
}
 0xb45   : > { %s3321_s2 = scalar_lea.hbm %s4043_s16, 512  ;;  %s3325_s26 = scalar_lea.hbm %s4138_s12, 1024 }
 0xb46   : > { %p3322_p10 = scmp.ne.s32.totalorder %s4043_s16, %s3321_s2  ;;  %p3326_p13 = scmp.lt.u32.totalorder %s4043_s16, %s4138_s12 }
 0xb47   : > { %p3327_p0 = scmp.lt.u32.totalorder %s3325_s26, %s3321_s2  ;;  %p3329_p2 = scmp.lt.u32.totalorder %s3321_s2, %s4043_s16 }
 0xb48   : > { %p3323_p11 = pnand %p3322_p10, %p3525_p5 }
 0xb49   : > { %p3328_p1 = por %p3327_p0, %p3326_p13 }
 0xb4a   : > { %p3324_p12 = pneg %p3323_p11 }
 0xb4b   : > { %p3330_p3 = por %p3329_p2, %p3328_p1 }
 0xb4d   : > { %p3331_p4 = pnand %p3330_p3, %p3324_p12 }
 0xb4f   : > { %3334 = shalt.err (!%p3331_p4)
}
 0xb50   : > { %3177 = dma.vmem_to_hbm [thread:$0]  (%p3525_p5), %s4037_s28, 512, %s4043_s16, %s4008_s3, %s3416_s4, %s3417_s5, %s4172_s29  }
 0xb51   : > { %v2991_v40 = vld [vmem:[%s4135_s9] ss:$0 sm:$0xff]  ;;  %s2943_s2 = sshll.u32 %s3686_s17, 3  ;;  %s4080_s4 = scalar_lea.hbm %s4136_s10, %s3997_s18 }
 0xb52   : > { %s408_s19 = scalar_lea.vmem [#allocation2], %s2943_s2  ;;  %v3278_v24 = vld [vmem:[%s3553_s15] sm:$0xff]  ;;  %s2766_s5 = scalar_lea.sflag [#allocation3], %s3686_s17 }
 0xb53   : > { %s2789_s0 = sshll.u32 %s408_s19, 4  ;;  %s3419_s15 = smov [#allocation2]   ;;  %s4082_s0 = int_to_ptr.vmem [resolvable:$true] %s2789_s0 }
 0xb54   : > { %s3335_s28 = scalar_lea.vmem %s4082_s0, 128  ;;  %s3339_s16 = sshll.u32 %s3419_s15, 4  ;;  %s3340_s16 = int_to_ptr.vmem [resolvable:$false] %s3339_s16 }
 0xb55   : > { %p3336_p7 = scmp.ne.s32.totalorder %s4082_s0, %s3335_s28  ;;  %s3341_s26 = scalar_lea.vmem %s3340_s16, 256 }
 0xb56   : > { %p3342_p10 = scmp.lt.s32.totalorder %s4082_s0, %s3340_s16  ;;  %p3343_p11 = scmp.lt.s32.totalorder %s3341_s26, %s3335_s28 }
 0xb57   : > { %p3337_p8 = pnand %p3336_p7, %p3525_p5 }
 0xb58   : > { %p3344_p12 = por %p3343_p11, %p3342_p10 }
 0xb59   : > { %p3338_p9 = pneg %p3337_p8 }
 0xb5b   : > { %p3345_p13 = pnand %p3344_p12, %p3338_p9 }
 0xbfe   : > { %v2747_v43 = vpop.f32.mrb[36].mxu1 }
 0xbff   : > { %v2748_v52 = vadd.f32 %v2991_v40, %v2747_v43  ;;  %v3173_v44 = vpop.f32.mrb[37].mxu1 }
 0xc00   : > { %v2750_v45 = vpop.f32.mrb[38].mxu1 }
 0xc01   : > { %v2753_v46 = vmax.f32 %v2748_v52, 0.0  ;;  %v3174_v49 = vpop.f32.mrb[39].mxu1 }
 0xc03   : > { %v2754_v50 = vadd.f32 %v2753_v46, %v3989_v38 }
 0xc05   : > { %v2755_v53 = vadd.f32 %v3278_v24, %v2754_v50 }
 0xc07   : > { %2756 = vst.msk [vmem:[%s408_s19] sm:$0xff] %vm454_vm1, %v2755_v53 }
 0xc08   : > { %3348 = shalt.err (!%p3345_p13)
}
 0xc09   : > { %s3349_s17 = scalar_lea.hbm %s4080_s4, 128  ;;  %s3353_s6 = scalar_lea.hbm %s4136_s10, 256 }
 0xc0a   : > { %p3350_p0 = scmp.ne.s32.totalorder %s4080_s4, %s3349_s17  ;;  %p3354_p3 = scmp.lt.u32.totalorder %s4080_s4, %s4136_s10 }
 0xc0b   : > { %p3355_p4 = scmp.lt.u32.totalorder %s3353_s6, %s3349_s17  ;;  %p3357_p8 = scmp.lt.u32.totalorder %s3349_s17, %s4080_s4 }
 0xc0c   : > { %p3351_p1 = pnand %p3350_p0, %p3525_p5 }
 0xc0d   : > { %p3356_p7 = por %p3355_p4, %p3354_p3 }
 0xc0e   : > { %p3352_p2 = pneg %p3351_p1 }
 0xc0f   : > { %p3358_p9 = por %p3357_p8, %p3356_p7 }
 0xc11   : > { %p3359_p10 = pnand %p3358_p9, %p3352_p2 }
 0xc13   : > { %3362 = shalt.err (!%p3359_p10)
}
 0xc14   : > { %3175 = dma.vmem_to_hbm [thread:$0]  (%p3525_p5), %s4082_s0, 128, %s4080_s4, %s2766_s5  }
 0xc15 PF: > { %p3191_p11 = scmp.ge.s32.totalorder %s3401_s24, 2  ;;  %s2831_s2 = sand.u32 1, %s3389_s21  }
 0xc16   : > { %s2832_s19 = scalar_lea.sflag [#allocation3], %s2831_s2 }
 0xc17   : > { %p3182_p12 = pnand %p3191_p11, %p3529_p6 }
 0xc19   : > { %3380 = dma.done.wait (!%p3182_p12), %s2832_s19, 128  }
 0xc1a   : > { %3382 = vsyncadd (!%p3182_p12), %s2832_s19, 4294967168  ;;  %s4175_s3 = sadd.s32 4294967294, %s3401_s24  }
 0xc1b   : > { %s2840_s29 = sand.u32 1, %s4175_s3  }
 0xc1c   : > { %s2841_s28 = scalar_lea.sflag [#allocation5], %s2840_s29 }
 0xc1d   : > { %3384 = dma.done.wait (!%p3182_p12), %s2841_s28, 1024  }
 0xc1e   : > { %3386 = vsyncadd (!%p3182_p12), %s2841_s28, 4294966272  ;;  %p26_p5 = scmp.ge.s32.totalorder %s3510_s27, 4   ;;  %s4176_s21 = smov %s3393_s22 }
 0xc1f   : > { %s4177_s22 = smov %s3397_s23  ;;  %s4178_s23 = smov %s3523_s30 }
 0xc20   : > { %s4179_s24 = smov %s3510_s27  ;;  %28 = sbr.rel (!%p26_p5) target bundleno = 13 (0xd), region = 127 }
 0xc27   :  { %2855 = vsyncpa [#allocation3], 1 }
 0xc28   :  { %2857 = vsyncpa [#allocation3 + $0x1], 1 }
 0xc29   :  { %2858 = vsyncpa [#allocation5], 1 }
 0xc2a   :  { %2860 = vsyncpa [#allocation5 + $0x1], 1 }

</bundles_post_ra>
